<compile_context>
chip_gen: v7x
topology: tpu7x:2x2x1
jax: 0.10.0
libtpu: 0.0.40
codegen_flags: <defaults>
</compile_context>

<pallas_src>
import functools

import jax
import jax.numpy as jnp
from jax import lax
from jax.experimental import pallas as pl
from jax.experimental.pallas import tpu as pltpu

_RING = 8  # in-flight DMA window per table (2 * _RING DMAs outstanding)


# ----------------------------------------------------------------------------
# Kernel: one grid step gathers `tok_block` rows from each table into the
# two pipelined VMEM output blocks via row DMAs.
# ----------------------------------------------------------------------------
def _gather_kernel(tok_block, ids_ref, real_hbm, imag_hbm,
                   out_r_ref, out_i_ref, sem):
    """ids_ref:   SMEM (n_pad,) int32 token ids (scalar prefetch)
    real_hbm:  HBM (V, D) real table   (memory_space=pl.ANY)
    imag_hbm:  HBM (V, D) imag table   (memory_space=pl.ANY)
    out_r_ref: VMEM (tok_block, D) pipelined output block (real rows)
    out_i_ref: VMEM (tok_block, D) pipelined output block (imag rows)
    sem:       DMA semaphores, shape (2, _RING)
    """
    base = pl.program_id(0) * tok_block

    def issue(t, slot):
        # NOTE: ids are trusted to be in [0, V); an OOB id would be an OOB DMA.
        row = ids_ref[base + t]
        pltpu.make_async_copy(real_hbm.at[pl.ds(row, 1), :],
                              out_r_ref.at[pl.ds(t, 1), :],
                              sem.at[0, slot]).start()
        pltpu.make_async_copy(imag_hbm.at[pl.ds(row, 1), :],
                              out_i_ref.at[pl.ds(t, 1), :],
                              sem.at[1, slot]).start()

    def wait_slot(slot):
        # Only shapes matter for the expected transfer size of the wait.
        pltpu.make_async_copy(real_hbm.at[pl.ds(0, 1), :],
                              out_r_ref.at[pl.ds(0, 1), :],
                              sem.at[0, slot]).wait()
        pltpu.make_async_copy(imag_hbm.at[pl.ds(0, 1), :],
                              out_i_ref.at[pl.ds(0, 1), :],
                              sem.at[1, slot]).wait()

    # Prime the in-flight window (static, small unroll).
    for s in range(_RING):
        issue(s, s)

    # Steady state: retire the oldest slot, immediately reuse it for row t.
    def body(t, carry):
        slot = t % _RING
        wait_slot(slot)
        issue(t, slot)
        return carry

    lax.fori_loop(_RING, tok_block, body, 0, unroll=8)

    # Drain: each slot has exactly one outstanding DMA pair left.
    for s in range(_RING):
        wait_slot(s)


# ----------------------------------------------------------------------------
# Wrapper
# ----------------------------------------------------------------------------
def complex_embedding_forward(input_ids, real_table, imag_table, *,
                              tok_block=256):
    V, D = real_table.shape
    assert imag_table.shape == (V, D)
    B, T = input_ids.shape
    n = B * T

    # Block size: >= ring, a multiple of the ring (and 8-sublane granule),
    # and no larger than the rounded-up token count so tiny calls stay tiny.
    tok_block = max(_RING, min(int(tok_block), pl.cdiv(n, _RING) * _RING))
    tok_block = pl.cdiv(tok_block, _RING) * _RING
    n_pad = pl.cdiv(n, tok_block) * tok_block

    # TODO(synk): for very long token streams, chunk `ids` in the wrapper so
    # the scalar-prefetch array stays within SMEM capacity.
    ids = jnp.pad(input_ids.reshape(-1).astype(jnp.int32), (0, n_pad - n))

    itemsize = jnp.dtype(real_table.dtype).itemsize
    block_bytes = 2 * tok_block * D * itemsize          # both outputs, 1 buffer
    # Explicit scoped-VMEM budget with headroom; capped for v7x (64 MiB phys).
    vmem_limit = int(min(max(4 * block_bytes + (2 << 20), 32 << 20), 48 << 20))

    kern = functools.partial(_gather_kernel, tok_block)
    out_r, out_i = pl.pallas_call(
        kern,
        out_shape=(jax.ShapeDtypeStruct((n_pad, D), real_table.dtype),
                   jax.ShapeDtypeStruct((n_pad, D), imag_table.dtype)),
        grid_spec=pltpu.PrefetchScalarGridSpec(
            num_scalar_prefetch=1,                       # ids -> SMEM
            grid=(n_pad // tok_block,),
            in_specs=[pl.BlockSpec(memory_space=pl.ANY),   # real table in HBM
                      pl.BlockSpec(memory_space=pl.ANY)],  # imag table in HBM
            out_specs=(pl.BlockSpec((tok_block, D), lambda b, ids: (b, 0)),
                       pl.BlockSpec((tok_block, D), lambda b, ids: (b, 0))),
            scratch_shapes=[pltpu.SemaphoreType.DMA((2, _RING))],
        ),
        compiler_params=pltpu.CompilerParams(
            dimension_semantics=("arbitrary",),
            vmem_limit_bytes=vmem_limit),
    )(ids, real_table, imag_table)

    r = out_r[:n].reshape(B, T, D)
    i = out_i[:n].reshape(B, T, D)
    if r.dtype not in (jnp.float32, jnp.float64):        # lax.complex wants float32+
        r = r.astype(jnp.float32)
        i = i.astype(jnp.float32)
    return lax.complex(r, i)                              # complex64 (B, T, D)


# ----------------------------------------------------------------------------
# Demo / self-check
# ----------------------------------------------------------------------------
if __name__ == "__main__":
    vocab_size, embed_dim = 64, 32
    B, T = 2, 8

    key = jax.random.PRNGKey(0)
    k_real, k_imag, k_ids = jax.random.split(key, 3)
    real_table = jax.random.normal(k_real, (vocab_size, embed_dim), jnp.float32)
    imag_table = jax.random.normal(k_imag, (vocab_size, embed_dim), jnp.float32)
    input_ids = jax.random.randint(k_ids, (B, T), 0, vocab_size, dtype=jnp.int32)

    out = complex_embedding_forward(input_ids, real_table, imag_table)
    out = jax.block_until_ready(out)

    # Pure-JAX reference: torch.complex(self.real[ids], self.imag[ids]).
    ref = lax.complex(jnp.take(real_table, input_ids, axis=0),
                      jnp.take(imag_table, input_ids, axis=0))

    assert out.shape == (B, T, embed_dim)
    assert out.dtype == jnp.complex64
    assert jnp.allclose(out.real, ref.real)
    assert jnp.allclose(out.imag, ref.imag)

    print("KERNEL_OK")
</pallas_src>

<mosaic_0001>
module attributes {stable_mosaic.version = 11 : i64} {
  func.func @_gather_kernel(%arg0: i32, %arg1: memref<16xi32, #tpu.memory_space<smem>>, %arg2: memref<64x32xf32, #tpu.memory_space<any>>, %arg3: memref<64x32xf32, #tpu.memory_space<any>>, %arg4: memref<16x32xf32, #tpu.memory_space<vmem>>, %arg5: memref<16x32xf32, #tpu.memory_space<vmem>>, %arg6: memref<2x8x!tpu.dma_semaphore, #tpu.memory_space<semaphore_mem>>) attributes {dimension_semantics = [#tpu.dimension_semantics<arbitrary>], iteration_bounds = array<i64: 1>, scalar_prefetch = 1 : i64, scratch_operands = 1 : i64, tpu.core_type = #tpu.core_type<tc>, window_params = [{}, {}, {transform_indices = @transform_2, window_bounds = array<i64: 16, 32>}, {transform_indices = @transform_3, window_bounds = array<i64: 16, 32>}]} {
    %c16_i32 = arith.constant 16 : i32
    %0 = arith.muli %arg0, %c16_i32 : i32
    %c0_i32 = arith.constant 0 : i32
    %1 = arith.addi %0, %c0_i32 : i32
    %2 = arith.index_cast %1 : i32 to index
    %3 = memref.load %arg1[%2] : memref<16xi32, #tpu.memory_space<smem>>
    %c0_i32_0 = arith.constant 0 : i32
    %c0_i32_1 = arith.constant 0 : i32
    %c0_i32_2 = arith.constant 0 : i32
    %4 = tpu.memref_slice %arg2[%3, %c0_i32_2] : memref<64x32xf32, #tpu.memory_space<any>> -> memref<1x32xf32, #tpu.memory_space<any>>
    %c0_i32_3 = arith.constant 0 : i32
    %c0_i32_4 = arith.constant 0 : i32
    %5 = tpu.memref_slice %arg4[%c0_i32_3, %c0_i32_4] : memref<16x32xf32, #tpu.memory_space<vmem>> -> memref<1x32xf32, #tpu.memory_space<vmem>>
    %6 = tpu.memref_slice %arg6[%c0_i32_0, %c0_i32_1] : memref<2x8x!tpu.dma_semaphore, #tpu.memory_space<semaphore_mem>> -> memref<1x1x!tpu.dma_semaphore, #tpu.memory_space<semaphore_mem>>
    %7 = tpu.memref_squeeze %6 : memref<1x1x!tpu.dma_semaphore, #tpu.memory_space<semaphore_mem>> -> memref<!tpu.dma_semaphore, #tpu.memory_space<semaphore_mem>>
    tpu.enqueue_dma source(%4 : memref<1x32xf32, #tpu.memory_space<any>>) target(%5 : memref<1x32xf32, #tpu.memory_space<vmem>>) target_semaphore(%7 : memref<!tpu.dma_semaphore, #tpu.memory_space<semaphore_mem>>)
    %c1_i32 = arith.constant 1 : i32
    %c0_i32_5 = arith.constant 0 : i32
    %c0_i32_6 = arith.constant 0 : i32
    %8 = tpu.memref_slice %arg3[%3, %c0_i32_6] : memref<64x32xf32, #tpu.memory_space<any>> -> memref<1x32xf32, #tpu.memory_space<any>>
    %c0_i32_7 = arith.constant 0 : i32
    %c0_i32_8 = arith.constant 0 : i32
    %9 = tpu.memref_slice %arg5[%c0_i32_7, %c0_i32_8] : memref<16x32xf32, #tpu.memory_space<vmem>> -> memref<1x32xf32, #tpu.memory_space<vmem>>
    %10 = tpu.memref_slice %arg6[%c1_i32, %c0_i32_5] : memref<2x8x!tpu.dma_semaphore, #tpu.memory_space<semaphore_mem>> -> memref<1x1x!tpu.dma_semaphore, #tpu.memory_space<semaphore_mem>>
    %11 = tpu.memref_squeeze %10 : memref<1x1x!tpu.dma_semaphore, #tpu.memory_space<semaphore_mem>> -> memref<!tpu.dma_semaphore, #tpu.memory_space<semaphore_mem>>
    tpu.enqueue_dma source(%8 : memref<1x32xf32, #tpu.memory_space<any>>) target(%9 : memref<1x32xf32, #tpu.memory_space<vmem>>) target_semaphore(%11 : memref<!tpu.dma_semaphore, #tpu.memory_space<semaphore_mem>>)
    %c1_i32_9 = arith.constant 1 : i32
    %12 = arith.addi %0, %c1_i32_9 : i32
    %13 = arith.index_cast %12 : i32 to index
    %14 = memref.load %arg1[%13] : memref<16xi32, #tpu.memory_space<smem>>
    %c0_i32_10 = arith.constant 0 : i32
    %c1_i32_11 = arith.constant 1 : i32
    %c0_i32_12 = arith.constant 0 : i32
    %15 = tpu.memref_slice %arg2[%14, %c0_i32_12] : memref<64x32xf32, #tpu.memory_space<any>> -> memref<1x32xf32, #tpu.memory_space<any>>
    %c1_i32_13 = arith.constant 1 : i32
    %c0_i32_14 = arith.constant 0 : i32
    %16 = tpu.memref_slice %arg4[%c1_i32_13, %c0_i32_14] : memref<16x32xf32, #tpu.memory_space<vmem>> -> memref<1x32xf32, #tpu.memory_space<vmem>>
    %17 = tpu.memref_slice %arg6[%c0_i32_10, %c1_i32_11] : memref<2x8x!tpu.dma_semaphore, #tpu.memory_space<semaphore_mem>> -> memref<1x1x!tpu.dma_semaphore, #tpu.memory_space<semaphore_mem>>
    %18 = tpu.memref_squeeze %17 : memref<1x1x!tpu.dma_semaphore, #tpu.memory_space<semaphore_mem>> -> memref<!tpu.dma_semaphore, #tpu.memory_space<semaphore_mem>>
    tpu.enqueue_dma source(%15 : memref<1x32xf32, #tpu.memory_space<any>>) target(%16 : memref<1x32xf32, #tpu.memory_space<vmem>>) target_semaphore(%18 : memref<!tpu.dma_semaphore, #tpu.memory_space<semaphore_mem>>)
    %c1_i32_15 = arith.constant 1 : i32
    %c1_i32_16 = arith.constant 1 : i32
    %c0_i32_17 = arith.constant 0 : i32
    %19 = tpu.memref_slice %arg3[%14, %c0_i32_17] : memref<64x32xf32, #tpu.memory_space<any>> -> memref<1x32xf32, #tpu.memory_space<any>>
    %c1_i32_18 = arith.constant 1 : i32
    %c0_i32_19 = arith.constant 0 : i32
    %20 = tpu.memref_slice %arg5[%c1_i32_18, %c0_i32_19] : memref<16x32xf32, #tpu.memory_space<vmem>> -> memref<1x32xf32, #tpu.memory_space<vmem>>
    %21 = tpu.memref_slice %arg6[%c1_i32_15, %c1_i32_16] : memref<2x8x!tpu.dma_semaphore, #tpu.memory_space<semaphore_mem>> -> memref<1x1x!tpu.dma_semaphore, #tpu.memory_space<semaphore_mem>>
    %22 = tpu.memref_squeeze %21 : memref<1x1x!tpu.dma_semaphore, #tpu.memory_space<semaphore_mem>> -> memref<!tpu.dma_semaphore, #tpu.memory_space<semaphore_mem>>
    tpu.enqueue_dma source(%19 : memref<1x32xf32, #tpu.memory_space<any>>) target(%20 : memref<1x32xf32, #tpu.memory_space<vmem>>) target_semaphore(%22 : memref<!tpu.dma_semaphore, #tpu.memory_space<semaphore_mem>>)
    %c2_i32 = arith.constant 2 : i32
    %23 = arith.addi %0, %c2_i32 : i32
    %24 = arith.index_cast %23 : i32 to index
    %25 = memref.load %arg1[%24] : memref<16xi32, #tpu.memory_space<smem>>
    %c0_i32_20 = arith.constant 0 : i32
    %c2_i32_21 = arith.constant 2 : i32
    %c0_i32_22 = arith.constant 0 : i32
    %26 = tpu.memref_slice %arg2[%25, %c0_i32_22] : memref<64x32xf32, #tpu.memory_space<any>> -> memref<1x32xf32, #tpu.memory_space<any>>
    %c2_i32_23 = arith.constant 2 : i32
    %c0_i32_24 = arith.constant 0 : i32
    %27 = tpu.memref_slice %arg4[%c2_i32_23, %c0_i32_24] : memref<16x32xf32, #tpu.memory_space<vmem>> -> memref<1x32xf32, #tpu.memory_space<vmem>>
    %28 = tpu.memref_slice %arg6[%c0_i32_20, %c2_i32_21] : memref<2x8x!tpu.dma_semaphore, #tpu.memory_space<semaphore_mem>> -> memref<1x1x!tpu.dma_semaphore, #tpu.memory_space<semaphore_mem>>
    %29 = tpu.memref_squeeze %28 : memref<1x1x!tpu.dma_semaphore, #tpu.memory_space<semaphore_mem>> -> memref<!tpu.dma_semaphore, #tpu.memory_space<semaphore_mem>>
    tpu.enqueue_dma source(%26 : memref<1x32xf32, #tpu.memory_space<any>>) target(%27 : memref<1x32xf32, #tpu.memory_space<vmem>>) target_semaphore(%29 : memref<!tpu.dma_semaphore, #tpu.memory_space<semaphore_mem>>)
    %c1_i32_25 = arith.constant 1 : i32
    %c2_i32_26 = arith.constant 2 : i32
    %c0_i32_27 = arith.constant 0 : i32
    %30 = tpu.memref_slice %arg3[%25, %c0_i32_27] : memref<64x32xf32, #tpu.memory_space<any>> -> memref<1x32xf32, #tpu.memory_space<any>>
    %c2_i32_28 = arith.constant 2 : i32
    %c0_i32_29 = arith.constant 0 : i32
    %31 = tpu.memref_slice %arg5[%c2_i32_28, %c0_i32_29] : memref<16x32xf32, #tpu.memory_space<vmem>> -> memref<1x32xf32, #tpu.memory_space<vmem>>
    %32 = tpu.memref_slice %arg6[%c1_i32_25, %c2_i32_26] : memref<2x8x!tpu.dma_semaphore, #tpu.memory_space<semaphore_mem>> -> memref<1x1x!tpu.dma_semaphore, #tpu.memory_space<semaphore_mem>>
    %33 = tpu.memref_squeeze %32 : memref<1x1x!tpu.dma_semaphore, #tpu.memory_space<semaphore_mem>> -> memref<!tpu.dma_semaphore, #tpu.memory_space<semaphore_mem>>
    tpu.enqueue_dma source(%30 : memref<1x32xf32, #tpu.memory_space<any>>) target(%31 : memref<1x32xf32, #tpu.memory_space<vmem>>) target_semaphore(%33 : memref<!tpu.dma_semaphore, #tpu.memory_space<semaphore_mem>>)
    %c3_i32 = arith.constant 3 : i32
    %34 = arith.addi %0, %c3_i32 : i32
    %35 = arith.index_cast %34 : i32 to index
    %36 = memref.load %arg1[%35] : memref<16xi32, #tpu.memory_space<smem>>
    %c0_i32_30 = arith.constant 0 : i32
    %c3_i32_31 = arith.constant 3 : i32
    %c0_i32_32 = arith.constant 0 : i32
    %37 = tpu.memref_slice %arg2[%36, %c0_i32_32] : memref<64x32xf32, #tpu.memory_space<any>> -> memref<1x32xf32, #tpu.memory_space<any>>
    %c3_i32_33 = arith.constant 3 : i32
    %c0_i32_34 = arith.constant 0 : i32
    %38 = tpu.memref_slice %arg4[%c3_i32_33, %c0_i32_34] : memref<16x32xf32, #tpu.memory_space<vmem>> -> memref<1x32xf32, #tpu.memory_space<vmem>>
    %39 = tpu.memref_slice %arg6[%c0_i32_30, %c3_i32_31] : memref<2x8x!tpu.dma_semaphore, #tpu.memory_space<semaphore_mem>> -> memref<1x1x!tpu.dma_semaphore, #tpu.memory_space<semaphore_mem>>
    %40 = tpu.memref_squeeze %39 : memref<1x1x!tpu.dma_semaphore, #tpu.memory_space<semaphore_mem>> -> memref<!tpu.dma_semaphore, #tpu.memory_space<semaphore_mem>>
    tpu.enqueue_dma source(%37 : memref<1x32xf32, #tpu.memory_space<any>>) target(%38 : memref<1x32xf32, #tpu.memory_space<vmem>>) target_semaphore(%40 : memref<!tpu.dma_semaphore, #tpu.memory_space<semaphore_mem>>)
    %c1_i32_35 = arith.constant 1 : i32
    %c3_i32_36 = arith.constant 3 : i32
    %c0_i32_37 = arith.constant 0 : i32
    %41 = tpu.memref_slice %arg3[%36, %c0_i32_37] : memref<64x32xf32, #tpu.memory_space<any>> -> memref<1x32xf32, #tpu.memory_space<any>>
    %c3_i32_38 = arith.constant 3 : i32
    %c0_i32_39 = arith.constant 0 : i32
    %42 = tpu.memref_slice %arg5[%c3_i32_38, %c0_i32_39] : memref<16x32xf32, #tpu.memory_space<vmem>> -> memref<1x32xf32, #tpu.memory_space<vmem>>
    %43 = tpu.memref_slice %arg6[%c1_i32_35, %c3_i32_36] : memref<2x8x!tpu.dma_semaphore, #tpu.memory_space<semaphore_mem>> -> memref<1x1x!tpu.dma_semaphore, #tpu.memory_space<semaphore_mem>>
    %44 = tpu.memref_squeeze %43 : memref<1x1x!tpu.dma_semaphore, #tpu.memory_space<semaphore_mem>> -> memref<!tpu.dma_semaphore, #tpu.memory_space<semaphore_mem>>
    tpu.enqueue_dma source(%41 : memref<1x32xf32, #tpu.memory_space<any>>) target(%42 : memref<1x32xf32, #tpu.memory_space<vmem>>) target_semaphore(%44 : memref<!tpu.dma_semaphore, #tpu.memory_space<semaphore_mem>>)
    %c4_i32 = arith.constant 4 : i32
    %45 = arith.addi %0, %c4_i32 : i32
    %46 = arith.index_cast %45 : i32 to index
    %47 = memref.load %arg1[%46] : memref<16xi32, #tpu.memory_space<smem>>
    %c0_i32_40 = arith.constant 0 : i32
    %c4_i32_41 = arith.constant 4 : i32
    %c0_i32_42 = arith.constant 0 : i32
    %48 = tpu.memref_slice %arg2[%47, %c0_i32_42] : memref<64x32xf32, #tpu.memory_space<any>> -> memref<1x32xf32, #tpu.memory_space<any>>
    %c4_i32_43 = arith.constant 4 : i32
    %c0_i32_44 = arith.constant 0 : i32
    %49 = tpu.memref_slice %arg4[%c4_i32_43, %c0_i32_44] : memref<16x32xf32, #tpu.memory_space<vmem>> -> memref<1x32xf32, #tpu.memory_space<vmem>>
    %50 = tpu.memref_slice %arg6[%c0_i32_40, %c4_i32_41] : memref<2x8x!tpu.dma_semaphore, #tpu.memory_space<semaphore_mem>> -> memref<1x1x!tpu.dma_semaphore, #tpu.memory_space<semaphore_mem>>
    %51 = tpu.memref_squeeze %50 : memref<1x1x!tpu.dma_semaphore, #tpu.memory_space<semaphore_mem>> -> memref<!tpu.dma_semaphore, #tpu.memory_space<semaphore_mem>>
    tpu.enqueue_dma source(%48 : memref<1x32xf32, #tpu.memory_space<any>>) target(%49 : memref<1x32xf32, #tpu.memory_space<vmem>>) target_semaphore(%51 : memref<!tpu.dma_semaphore, #tpu.memory_space<semaphore_mem>>)
    %c1_i32_45 = arith.constant 1 : i32
    %c4_i32_46 = arith.constant 4 : i32
    %c0_i32_47 = arith.constant 0 : i32
    %52 = tpu.memref_slice %arg3[%47, %c0_i32_47] : memref<64x32xf32, #tpu.memory_space<any>> -> memref<1x32xf32, #tpu.memory_space<any>>
    %c4_i32_48 = arith.constant 4 : i32
    %c0_i32_49 = arith.constant 0 : i32
    %53 = tpu.memref_slice %arg5[%c4_i32_48, %c0_i32_49] : memref<16x32xf32, #tpu.memory_space<vmem>> -> memref<1x32xf32, #tpu.memory_space<vmem>>
    %54 = tpu.memref_slice %arg6[%c1_i32_45, %c4_i32_46] : memref<2x8x!tpu.dma_semaphore, #tpu.memory_space<semaphore_mem>> -> memref<1x1x!tpu.dma_semaphore, #tpu.memory_space<semaphore_mem>>
    %55 = tpu.memref_squeeze %54 : memref<1x1x!tpu.dma_semaphore, #tpu.memory_space<semaphore_mem>> -> memref<!tpu.dma_semaphore, #tpu.memory_space<semaphore_mem>>
    tpu.enqueue_dma source(%52 : memref<1x32xf32, #tpu.memory_space<any>>) target(%53 : memref<1x32xf32, #tpu.memory_space<vmem>>) target_semaphore(%55 : memref<!tpu.dma_semaphore, #tpu.memory_space<semaphore_mem>>)
    %c5_i32 = arith.constant 5 : i32
    %56 = arith.addi %0, %c5_i32 : i32
    %57 = arith.index_cast %56 : i32 to index
    %58 = memref.load %arg1[%57] : memref<16xi32, #tpu.memory_space<smem>>
    %c0_i32_50 = arith.constant 0 : i32
    %c5_i32_51 = arith.constant 5 : i32
    %c0_i32_52 = arith.constant 0 : i32
    %59 = tpu.memref_slice %arg2[%58, %c0_i32_52] : memref<64x32xf32, #tpu.memory_space<any>> -> memref<1x32xf32, #tpu.memory_space<any>>
    %c5_i32_53 = arith.constant 5 : i32
    %c0_i32_54 = arith.constant 0 : i32
    %60 = tpu.memref_slice %arg4[%c5_i32_53, %c0_i32_54] : memref<16x32xf32, #tpu.memory_space<vmem>> -> memref<1x32xf32, #tpu.memory_space<vmem>>
    %61 = tpu.memref_slice %arg6[%c0_i32_50, %c5_i32_51] : memref<2x8x!tpu.dma_semaphore, #tpu.memory_space<semaphore_mem>> -> memref<1x1x!tpu.dma_semaphore, #tpu.memory_space<semaphore_mem>>
    %62 = tpu.memref_squeeze %61 : memref<1x1x!tpu.dma_semaphore, #tpu.memory_space<semaphore_mem>> -> memref<!tpu.dma_semaphore, #tpu.memory_space<semaphore_mem>>
    tpu.enqueue_dma source(%59 : memref<1x32xf32, #tpu.memory_space<any>>) target(%60 : memref<1x32xf32, #tpu.memory_space<vmem>>) target_semaphore(%62 : memref<!tpu.dma_semaphore, #tpu.memory_space<semaphore_mem>>)
    %c1_i32_55 = arith.constant 1 : i32
    %c5_i32_56 = arith.constant 5 : i32
    %c0_i32_57 = arith.constant 0 : i32
    %63 = tpu.memref_slice %arg3[%58, %c0_i32_57] : memref<64x32xf32, #tpu.memory_space<any>> -> memref<1x32xf32, #tpu.memory_space<any>>
    %c5_i32_58 = arith.constant 5 : i32
    %c0_i32_59 = arith.constant 0 : i32
    %64 = tpu.memref_slice %arg5[%c5_i32_58, %c0_i32_59] : memref<16x32xf32, #tpu.memory_space<vmem>> -> memref<1x32xf32, #tpu.memory_space<vmem>>
    %65 = tpu.memref_slice %arg6[%c1_i32_55, %c5_i32_56] : memref<2x8x!tpu.dma_semaphore, #tpu.memory_space<semaphore_mem>> -> memref<1x1x!tpu.dma_semaphore, #tpu.memory_space<semaphore_mem>>
    %66 = tpu.memref_squeeze %65 : memref<1x1x!tpu.dma_semaphore, #tpu.memory_space<semaphore_mem>> -> memref<!tpu.dma_semaphore, #tpu.memory_space<semaphore_mem>>
    tpu.enqueue_dma source(%63 : memref<1x32xf32, #tpu.memory_space<any>>) target(%64 : memref<1x32xf32, #tpu.memory_space<vmem>>) target_semaphore(%66 : memref<!tpu.dma_semaphore, #tpu.memory_space<semaphore_mem>>)
    %c6_i32 = arith.constant 6 : i32
    %67 = arith.addi %0, %c6_i32 : i32
    %68 = arith.index_cast %67 : i32 to index
    %69 = memref.load %arg1[%68] : memref<16xi32, #tpu.memory_space<smem>>
    %c0_i32_60 = arith.constant 0 : i32
    %c6_i32_61 = arith.constant 6 : i32
    %c0_i32_62 = arith.constant 0 : i32
    %70 = tpu.memref_slice %arg2[%69, %c0_i32_62] : memref<64x32xf32, #tpu.memory_space<any>> -> memref<1x32xf32, #tpu.memory_space<any>>
    %c6_i32_63 = arith.constant 6 : i32
    %c0_i32_64 = arith.constant 0 : i32
    %71 = tpu.memref_slice %arg4[%c6_i32_63, %c0_i32_64] : memref<16x32xf32, #tpu.memory_space<vmem>> -> memref<1x32xf32, #tpu.memory_space<vmem>>
    %72 = tpu.memref_slice %arg6[%c0_i32_60, %c6_i32_61] : memref<2x8x!tpu.dma_semaphore, #tpu.memory_space<semaphore_mem>> -> memref<1x1x!tpu.dma_semaphore, #tpu.memory_space<semaphore_mem>>
    %73 = tpu.memref_squeeze %72 : memref<1x1x!tpu.dma_semaphore, #tpu.memory_space<semaphore_mem>> -> memref<!tpu.dma_semaphore, #tpu.memory_space<semaphore_mem>>
    tpu.enqueue_dma source(%70 : memref<1x32xf32, #tpu.memory_space<any>>) target(%71 : memref<1x32xf32, #tpu.memory_space<vmem>>) target_semaphore(%73 : memref<!tpu.dma_semaphore, #tpu.memory_space<semaphore_mem>>)
    %c1_i32_65 = arith.constant 1 : i32
    %c6_i32_66 = arith.constant 6 : i32
    %c0_i32_67 = arith.constant 0 : i32
    %74 = tpu.memref_slice %arg3[%69, %c0_i32_67] : memref<64x32xf32, #tpu.memory_space<any>> -> memref<1x32xf32, #tpu.memory_space<any>>
    %c6_i32_68 = arith.constant 6 : i32
    %c0_i32_69 = arith.constant 0 : i32
    %75 = tpu.memref_slice %arg5[%c6_i32_68, %c0_i32_69] : memref<16x32xf32, #tpu.memory_space<vmem>> -> memref<1x32xf32, #tpu.memory_space<vmem>>
    %76 = tpu.memref_slice %arg6[%c1_i32_65, %c6_i32_66] : memref<2x8x!tpu.dma_semaphore, #tpu.memory_space<semaphore_mem>> -> memref<1x1x!tpu.dma_semaphore, #tpu.memory_space<semaphore_mem>>
    %77 = tpu.memref_squeeze %76 : memref<1x1x!tpu.dma_semaphore, #tpu.memory_space<semaphore_mem>> -> memref<!tpu.dma_semaphore, #tpu.memory_space<semaphore_mem>>
    tpu.enqueue_dma source(%74 : memref<1x32xf32, #tpu.memory_space<any>>) target(%75 : memref<1x32xf32, #tpu.memory_space<vmem>>) target_semaphore(%77 : memref<!tpu.dma_semaphore, #tpu.memory_space<semaphore_mem>>)
    %c7_i32 = arith.constant 7 : i32
    %78 = arith.addi %0, %c7_i32 : i32
    %79 = arith.index_cast %78 : i32 to index
    %80 = memref.load %arg1[%79] : memref<16xi32, #tpu.memory_space<smem>>
    %c0_i32_70 = arith.constant 0 : i32
    %c7_i32_71 = arith.constant 7 : i32
    %c0_i32_72 = arith.constant 0 : i32
    %81 = tpu.memref_slice %arg2[%80, %c0_i32_72] : memref<64x32xf32, #tpu.memory_space<any>> -> memref<1x32xf32, #tpu.memory_space<any>>
    %c7_i32_73 = arith.constant 7 : i32
    %c0_i32_74 = arith.constant 0 : i32
    %82 = tpu.memref_slice %arg4[%c7_i32_73, %c0_i32_74] : memref<16x32xf32, #tpu.memory_space<vmem>> -> memref<1x32xf32, #tpu.memory_space<vmem>>
    %83 = tpu.memref_slice %arg6[%c0_i32_70, %c7_i32_71] : memref<2x8x!tpu.dma_semaphore, #tpu.memory_space<semaphore_mem>> -> memref<1x1x!tpu.dma_semaphore, #tpu.memory_space<semaphore_mem>>
    %84 = tpu.memref_squeeze %83 : memref<1x1x!tpu.dma_semaphore, #tpu.memory_space<semaphore_mem>> -> memref<!tpu.dma_semaphore, #tpu.memory_space<semaphore_mem>>
    tpu.enqueue_dma source(%81 : memref<1x32xf32, #tpu.memory_space<any>>) target(%82 : memref<1x32xf32, #tpu.memory_space<vmem>>) target_semaphore(%84 : memref<!tpu.dma_semaphore, #tpu.memory_space<semaphore_mem>>)
    %c1_i32_75 = arith.constant 1 : i32
    %c7_i32_76 = arith.constant 7 : i32
    %c0_i32_77 = arith.constant 0 : i32
    %85 = tpu.memref_slice %arg3[%80, %c0_i32_77] : memref<64x32xf32, #tpu.memory_space<any>> -> memref<1x32xf32, #tpu.memory_space<any>>
    %c7_i32_78 = arith.constant 7 : i32
    %c0_i32_79 = arith.constant 0 : i32
    %86 = tpu.memref_slice %arg5[%c7_i32_78, %c0_i32_79] : memref<16x32xf32, #tpu.memory_space<vmem>> -> memref<1x32xf32, #tpu.memory_space<vmem>>
    %87 = tpu.memref_slice %arg6[%c1_i32_75, %c7_i32_76] : memref<2x8x!tpu.dma_semaphore, #tpu.memory_space<semaphore_mem>> -> memref<1x1x!tpu.dma_semaphore, #tpu.memory_space<semaphore_mem>>
    %88 = tpu.memref_squeeze %87 : memref<1x1x!tpu.dma_semaphore, #tpu.memory_space<semaphore_mem>> -> memref<!tpu.dma_semaphore, #tpu.memory_space<semaphore_mem>>
    tpu.enqueue_dma source(%85 : memref<1x32xf32, #tpu.memory_space<any>>) target(%86 : memref<1x32xf32, #tpu.memory_space<vmem>>) target_semaphore(%88 : memref<!tpu.dma_semaphore, #tpu.memory_space<semaphore_mem>>)
    %c8_i32 = arith.constant 8 : i32
    %c8_i32_80 = arith.constant 8 : i32
    %c0_i32_81 = arith.constant 0 : i32
    %89 = arith.cmpi eq, %c8_i32_80, %c0_i32_81 : i32
    %c1_i32_82 = arith.constant 1 : i32
    %90 = arith.select %89, %c1_i32_82, %c8_i32_80 : i32
    %91 = arith.remsi %c8_i32, %90 : i32
    %c0_i32_83 = arith.constant 0 : i32
    %92 = arith.cmpi ne, %91, %c0_i32_83 : i32
    %c0_i32_84 = arith.constant 0 : i32
    %93 = arith.cmpi slt, %91, %c0_i32_84 : i32
    %c0_i32_85 = arith.constant 0 : i32
    %94 = arith.cmpi slt, %90, %c0_i32_85 : i32
    %95 = arith.xori %93, %94 : i1
    %96 = arith.andi %95, %92 : i1
    %97 = arith.addi %91, %90 : i32
    %98 = arith.select %96, %97, %91 : i32
    %c0_i32_86 = arith.constant 0 : i32
    %c0_i32_87 = arith.constant 0 : i32
    %c0_i32_88 = arith.constant 0 : i32
    %99 = tpu.memref_slice %arg2[%c0_i32_87, %c0_i32_88] : memref<64x32xf32, #tpu.memory_space<any>> -> memref<1x32xf32, #tpu.memory_space<any>>
    %c0_i32_89 = arith.constant 0 : i32
    %c0_i32_90 = arith.constant 0 : i32
    %100 = tpu.memref_slice %arg4[%c0_i32_89, %c0_i32_90] : memref<16x32xf32, #tpu.memory_space<vmem>> -> memref<1x32xf32, #tpu.memory_space<vmem>>
    %101 = tpu.memref_slice %arg6[%c0_i32_86, %98] : memref<2x8x!tpu.dma_semaphore, #tpu.memory_space<semaphore_mem>> -> memref<1x1x!tpu.dma_semaphore, #tpu.memory_space<semaphore_mem>>
    %102 = tpu.memref_squeeze %101 : memref<1x1x!tpu.dma_semaphore, #tpu.memory_space<semaphore_mem>> -> memref<!tpu.dma_semaphore, #tpu.memory_space<semaphore_mem>>
    tpu.wait_dma2 semaphore(%102 : memref<!tpu.dma_semaphore, #tpu.memory_space<semaphore_mem>>) src(%99 : memref<1x32xf32, #tpu.memory_space<any>>) dst(%100 : memref<1x32xf32, #tpu.memory_space<vmem>>)
    %c1_i32_91 = arith.constant 1 : i32
    %c0_i32_92 = arith.constant 0 : i32
    %c0_i32_93 = arith.constant 0 : i32
    %103 = tpu.memref_slice %arg3[%c0_i32_92, %c0_i32_93] : memref<64x32xf32, #tpu.memory_space<any>> -> memref<1x32xf32, #tpu.memory_space<any>>
    %c0_i32_94 = arith.constant 0 : i32
    %c0_i32_95 = arith.constant 0 : i32
    %104 = tpu.memref_slice %arg5[%c0_i32_94, %c0_i32_95] : memref<16x32xf32, #tpu.memory_space<vmem>> -> memref<1x32xf32, #tpu.memory_space<vmem>>
    %105 = tpu.memref_slice %arg6[%c1_i32_91, %98] : memref<2x8x!tpu.dma_semaphore, #tpu.memory_space<semaphore_mem>> -> memref<1x1x!tpu.dma_semaphore, #tpu.memory_space<semaphore_mem>>
    %106 = tpu.memref_squeeze %105 : memref<1x1x!tpu.dma_semaphore, #tpu.memory_space<semaphore_mem>> -> memref<!tpu.dma_semaphore, #tpu.memory_space<semaphore_mem>>
    tpu.wait_dma2 semaphore(%106 : memref<!tpu.dma_semaphore, #tpu.memory_space<semaphore_mem>>) src(%103 : memref<1x32xf32, #tpu.memory_space<any>>) dst(%104 : memref<1x32xf32, #tpu.memory_space<vmem>>)
    %107 = arith.addi %0, %c8_i32 : i32
    %108 = arith.index_cast %107 : i32 to index
    %109 = memref.load %arg1[%108] : memref<16xi32, #tpu.memory_space<smem>>
    %c0_i32_96 = arith.constant 0 : i32
    %c0_i32_97 = arith.constant 0 : i32
    %110 = tpu.memref_slice %arg2[%109, %c0_i32_97] : memref<64x32xf32, #tpu.memory_space<any>> -> memref<1x32xf32, #tpu.memory_space<any>>
    %c0_i32_98 = arith.constant 0 : i32
    %111 = tpu.memref_slice %arg4[%c8_i32, %c0_i32_98] : memref<16x32xf32, #tpu.memory_space<vmem>> -> memref<1x32xf32, #tpu.memory_space<vmem>>
    %112 = tpu.memref_slice %arg6[%c0_i32_96, %98] : memref<2x8x!tpu.dma_semaphore, #tpu.memory_space<semaphore_mem>> -> memref<1x1x!tpu.dma_semaphore, #tpu.memory_space<semaphore_mem>>
    %113 = tpu.memref_squeeze %112 : memref<1x1x!tpu.dma_semaphore, #tpu.memory_space<semaphore_mem>> -> memref<!tpu.dma_semaphore, #tpu.memory_space<semaphore_mem>>
    tpu.enqueue_dma source(%110 : memref<1x32xf32, #tpu.memory_space<any>>) target(%111 : memref<1x32xf32, #tpu.memory_space<vmem>>) target_semaphore(%113 : memref<!tpu.dma_semaphore, #tpu.memory_space<semaphore_mem>>)
    %c1_i32_99 = arith.constant 1 : i32
    %c0_i32_100 = arith.constant 0 : i32
    %114 = tpu.memref_slice %arg3[%109, %c0_i32_100] : memref<64x32xf32, #tpu.memory_space<any>> -> memref<1x32xf32, #tpu.memory_space<any>>
    %c0_i32_101 = arith.constant 0 : i32
    %115 = tpu.memref_slice %arg5[%c8_i32, %c0_i32_101] : memref<16x32xf32, #tpu.memory_space<vmem>> -> memref<1x32xf32, #tpu.memory_space<vmem>>
    %116 = tpu.memref_slice %arg6[%c1_i32_99, %98] : memref<2x8x!tpu.dma_semaphore, #tpu.memory_space<semaphore_mem>> -> memref<1x1x!tpu.dma_semaphore, #tpu.memory_space<semaphore_mem>>
    %117 = tpu.memref_squeeze %116 : memref<1x1x!tpu.dma_semaphore, #tpu.memory_space<semaphore_mem>> -> memref<!tpu.dma_semaphore, #tpu.memory_space<semaphore_mem>>
    tpu.enqueue_dma source(%114 : memref<1x32xf32, #tpu.memory_space<any>>) target(%115 : memref<1x32xf32, #tpu.memory_space<vmem>>) target_semaphore(%117 : memref<!tpu.dma_semaphore, #tpu.memory_space<semaphore_mem>>)
    %c9_i32 = arith.constant 9 : i32
    %c8_i32_102 = arith.constant 8 : i32
    %c0_i32_103 = arith.constant 0 : i32
    %118 = arith.cmpi eq, %c8_i32_102, %c0_i32_103 : i32
    %c1_i32_104 = arith.constant 1 : i32
    %119 = arith.select %118, %c1_i32_104, %c8_i32_102 : i32
    %120 = arith.remsi %c9_i32, %119 : i32
    %c0_i32_105 = arith.constant 0 : i32
    %121 = arith.cmpi ne, %120, %c0_i32_105 : i32
    %c0_i32_106 = arith.constant 0 : i32
    %122 = arith.cmpi slt, %120, %c0_i32_106 : i32
    %c0_i32_107 = arith.constant 0 : i32
    %123 = arith.cmpi slt, %119, %c0_i32_107 : i32
    %124 = arith.xori %122, %123 : i1
    %125 = arith.andi %124, %121 : i1
    %126 = arith.addi %120, %119 : i32
    %127 = arith.select %125, %126, %120 : i32
    %c0_i32_108 = arith.constant 0 : i32
    %c0_i32_109 = arith.constant 0 : i32
    %c0_i32_110 = arith.constant 0 : i32
    %128 = tpu.memref_slice %arg2[%c0_i32_109, %c0_i32_110] : memref<64x32xf32, #tpu.memory_space<any>> -> memref<1x32xf32, #tpu.memory_space<any>>
    %c0_i32_111 = arith.constant 0 : i32
    %c0_i32_112 = arith.constant 0 : i32
    %129 = tpu.memref_slice %arg4[%c0_i32_111, %c0_i32_112] : memref<16x32xf32, #tpu.memory_space<vmem>> -> memref<1x32xf32, #tpu.memory_space<vmem>>
    %130 = tpu.memref_slice %arg6[%c0_i32_108, %127] : memref<2x8x!tpu.dma_semaphore, #tpu.memory_space<semaphore_mem>> -> memref<1x1x!tpu.dma_semaphore, #tpu.memory_space<semaphore_mem>>
    %131 = tpu.memref_squeeze %130 : memref<1x1x!tpu.dma_semaphore, #tpu.memory_space<semaphore_mem>> -> memref<!tpu.dma_semaphore, #tpu.memory_space<semaphore_mem>>
    tpu.wait_dma2 semaphore(%131 : memref<!tpu.dma_semaphore, #tpu.memory_space<semaphore_mem>>) src(%128 : memref<1x32xf32, #tpu.memory_space<any>>) dst(%129 : memref<1x32xf32, #tpu.memory_space<vmem>>)
    %c1_i32_113 = arith.constant 1 : i32
    %c0_i32_114 = arith.constant 0 : i32
    %c0_i32_115 = arith.constant 0 : i32
    %132 = tpu.memref_slice %arg3[%c0_i32_114, %c0_i32_115] : memref<64x32xf32, #tpu.memory_space<any>> -> memref<1x32xf32, #tpu.memory_space<any>>
    %c0_i32_116 = arith.constant 0 : i32
    %c0_i32_117 = arith.constant 0 : i32
    %133 = tpu.memref_slice %arg5[%c0_i32_116, %c0_i32_117] : memref<16x32xf32, #tpu.memory_space<vmem>> -> memref<1x32xf32, #tpu.memory_space<vmem>>
    %134 = tpu.memref_slice %arg6[%c1_i32_113, %127] : memref<2x8x!tpu.dma_semaphore, #tpu.memory_space<semaphore_mem>> -> memref<1x1x!tpu.dma_semaphore, #tpu.memory_space<semaphore_mem>>
    %135 = tpu.memref_squeeze %134 : memref<1x1x!tpu.dma_semaphore, #tpu.memory_space<semaphore_mem>> -> memref<!tpu.dma_semaphore, #tpu.memory_space<semaphore_mem>>
    tpu.wait_dma2 semaphore(%135 : memref<!tpu.dma_semaphore, #tpu.memory_space<semaphore_mem>>) src(%132 : memref<1x32xf32, #tpu.memory_space<any>>) dst(%133 : memref<1x32xf32, #tpu.memory_space<vmem>>)
    %136 = arith.addi %0, %c9_i32 : i32
    %137 = arith.index_cast %136 : i32 to index
    %138 = memref.load %arg1[%137] : memref<16xi32, #tpu.memory_space<smem>>
    %c0_i32_118 = arith.constant 0 : i32
    %c0_i32_119 = arith.constant 0 : i32
    %139 = tpu.memref_slice %arg2[%138, %c0_i32_119] : memref<64x32xf32, #tpu.memory_space<any>> -> memref<1x32xf32, #tpu.memory_space<any>>
    %c0_i32_120 = arith.constant 0 : i32
    %140 = tpu.memref_slice %arg4[%c9_i32, %c0_i32_120] : memref<16x32xf32, #tpu.memory_space<vmem>> -> memref<1x32xf32, #tpu.memory_space<vmem>>
    %141 = tpu.memref_slice %arg6[%c0_i32_118, %127] : memref<2x8x!tpu.dma_semaphore, #tpu.memory_space<semaphore_mem>> -> memref<1x1x!tpu.dma_semaphore, #tpu.memory_space<semaphore_mem>>
    %142 = tpu.memref_squeeze %141 : memref<1x1x!tpu.dma_semaphore, #tpu.memory_space<semaphore_mem>> -> memref<!tpu.dma_semaphore, #tpu.memory_space<semaphore_mem>>
    tpu.enqueue_dma source(%139 : memref<1x32xf32, #tpu.memory_space<any>>) target(%140 : memref<1x32xf32, #tpu.memory_space<vmem>>) target_semaphore(%142 : memref<!tpu.dma_semaphore, #tpu.memory_space<semaphore_mem>>)
    %c1_i32_121 = arith.constant 1 : i32
    %c0_i32_122 = arith.constant 0 : i32
    %143 = tpu.memref_slice %arg3[%138, %c0_i32_122] : memref<64x32xf32, #tpu.memory_space<any>> -> memref<1x32xf32, #tpu.memory_space<any>>
    %c0_i32_123 = arith.constant 0 : i32
    %144 = tpu.memref_slice %arg5[%c9_i32, %c0_i32_123] : memref<16x32xf32, #tpu.memory_space<vmem>> -> memref<1x32xf32, #tpu.memory_space<vmem>>
    %145 = tpu.memref_slice %arg6[%c1_i32_121, %127] : memref<2x8x!tpu.dma_semaphore, #tpu.memory_space<semaphore_mem>> -> memref<1x1x!tpu.dma_semaphore, #tpu.memory_space<semaphore_mem>>
    %146 = tpu.memref_squeeze %145 : memref<1x1x!tpu.dma_semaphore, #tpu.memory_space<semaphore_mem>> -> memref<!tpu.dma_semaphore, #tpu.memory_space<semaphore_mem>>
    tpu.enqueue_dma source(%143 : memref<1x32xf32, #tpu.memory_space<any>>) target(%144 : memref<1x32xf32, #tpu.memory_space<vmem>>) target_semaphore(%146 : memref<!tpu.dma_semaphore, #tpu.memory_space<semaphore_mem>>)
    %c10_i32 = arith.constant 10 : i32
    %c8_i32_124 = arith.constant 8 : i32
    %c0_i32_125 = arith.constant 0 : i32
    %147 = arith.cmpi eq, %c8_i32_124, %c0_i32_125 : i32
    %c1_i32_126 = arith.constant 1 : i32
    %148 = arith.select %147, %c1_i32_126, %c8_i32_124 : i32
    %149 = arith.remsi %c10_i32, %148 : i32
    %c0_i32_127 = arith.constant 0 : i32
    %150 = arith.cmpi ne, %149, %c0_i32_127 : i32
    %c0_i32_128 = arith.constant 0 : i32
    %151 = arith.cmpi slt, %149, %c0_i32_128 : i32
    %c0_i32_129 = arith.constant 0 : i32
    %152 = arith.cmpi slt, %148, %c0_i32_129 : i32
    %153 = arith.xori %151, %152 : i1
    %154 = arith.andi %153, %150 : i1
    %155 = arith.addi %149, %148 : i32
    %156 = arith.select %154, %155, %149 : i32
    %c0_i32_130 = arith.constant 0 : i32
    %c0_i32_131 = arith.constant 0 : i32
    %c0_i32_132 = arith.constant 0 : i32
    %157 = tpu.memref_slice %arg2[%c0_i32_131, %c0_i32_132] : memref<64x32xf32, #tpu.memory_space<any>> -> memref<1x32xf32, #tpu.memory_space<any>>
    %c0_i32_133 = arith.constant 0 : i32
    %c0_i32_134 = arith.constant 0 : i32
    %158 = tpu.memref_slice %arg4[%c0_i32_133, %c0_i32_134] : memref<16x32xf32, #tpu.memory_space<vmem>> -> memref<1x32xf32, #tpu.memory_space<vmem>>
    %159 = tpu.memref_slice %arg6[%c0_i32_130, %156] : memref<2x8x!tpu.dma_semaphore, #tpu.memory_space<semaphore_mem>> -> memref<1x1x!tpu.dma_semaphore, #tpu.memory_space<semaphore_mem>>
    %160 = tpu.memref_squeeze %159 : memref<1x1x!tpu.dma_semaphore, #tpu.memory_space<semaphore_mem>> -> memref<!tpu.dma_semaphore, #tpu.memory_space<semaphore_mem>>
    tpu.wait_dma2 semaphore(%160 : memref<!tpu.dma_semaphore, #tpu.memory_space<semaphore_mem>>) src(%157 : memref<1x32xf32, #tpu.memory_space<any>>) dst(%158 : memref<1x32xf32, #tpu.memory_space<vmem>>)
    %c1_i32_135 = arith.constant 1 : i32
    %c0_i32_136 = arith.constant 0 : i32
    %c0_i32_137 = arith.constant 0 : i32
    %161 = tpu.memref_slice %arg3[%c0_i32_136, %c0_i32_137] : memref<64x32xf32, #tpu.memory_space<any>> -> memref<1x32xf32, #tpu.memory_space<any>>
    %c0_i32_138 = arith.constant 0 : i32
    %c0_i32_139 = arith.constant 0 : i32
    %162 = tpu.memref_slice %arg5[%c0_i32_138, %c0_i32_139] : memref<16x32xf32, #tpu.memory_space<vmem>> -> memref<1x32xf32, #tpu.memory_space<vmem>>
    %163 = tpu.memref_slice %arg6[%c1_i32_135, %156] : memref<2x8x!tpu.dma_semaphore, #tpu.memory_space<semaphore_mem>> -> memref<1x1x!tpu.dma_semaphore, #tpu.memory_space<semaphore_mem>>
    %164 = tpu.memref_squeeze %163 : memref<1x1x!tpu.dma_semaphore, #tpu.memory_space<semaphore_mem>> -> memref<!tpu.dma_semaphore, #tpu.memory_space<semaphore_mem>>
    tpu.wait_dma2 semaphore(%164 : memref<!tpu.dma_semaphore, #tpu.memory_space<semaphore_mem>>) src(%161 : memref<1x32xf32, #tpu.memory_space<any>>) dst(%162 : memref<1x32xf32, #tpu.memory_space<vmem>>)
    %165 = arith.addi %0, %c10_i32 : i32
    %166 = arith.index_cast %165 : i32 to index
    %167 = memref.load %arg1[%166] : memref<16xi32, #tpu.memory_space<smem>>
    %c0_i32_140 = arith.constant 0 : i32
    %c0_i32_141 = arith.constant 0 : i32
    %168 = tpu.memref_slice %arg2[%167, %c0_i32_141] : memref<64x32xf32, #tpu.memory_space<any>> -> memref<1x32xf32, #tpu.memory_space<any>>
    %c0_i32_142 = arith.constant 0 : i32
    %169 = tpu.memref_slice %arg4[%c10_i32, %c0_i32_142] : memref<16x32xf32, #tpu.memory_space<vmem>> -> memref<1x32xf32, #tpu.memory_space<vmem>>
    %170 = tpu.memref_slice %arg6[%c0_i32_140, %156] : memref<2x8x!tpu.dma_semaphore, #tpu.memory_space<semaphore_mem>> -> memref<1x1x!tpu.dma_semaphore, #tpu.memory_space<semaphore_mem>>
    %171 = tpu.memref_squeeze %170 : memref<1x1x!tpu.dma_semaphore, #tpu.memory_space<semaphore_mem>> -> memref<!tpu.dma_semaphore, #tpu.memory_space<semaphore_mem>>
    tpu.enqueue_dma source(%168 : memref<1x32xf32, #tpu.memory_space<any>>) target(%169 : memref<1x32xf32, #tpu.memory_space<vmem>>) target_semaphore(%171 : memref<!tpu.dma_semaphore, #tpu.memory_space<semaphore_mem>>)
    %c1_i32_143 = arith.constant 1 : i32
    %c0_i32_144 = arith.constant 0 : i32
    %172 = tpu.memref_slice %arg3[%167, %c0_i32_144] : memref<64x32xf32, #tpu.memory_space<any>> -> memref<1x32xf32, #tpu.memory_space<any>>
    %c0_i32_145 = arith.constant 0 : i32
    %173 = tpu.memref_slice %arg5[%c10_i32, %c0_i32_145] : memref<16x32xf32, #tpu.memory_space<vmem>> -> memref<1x32xf32, #tpu.memory_space<vmem>>
    %174 = tpu.memref_slice %arg6[%c1_i32_143, %156] : memref<2x8x!tpu.dma_semaphore, #tpu.memory_space<semaphore_mem>> -> memref<1x1x!tpu.dma_semaphore, #tpu.memory_space<semaphore_mem>>
    %175 = tpu.memref_squeeze %174 : memref<1x1x!tpu.dma_semaphore, #tpu.memory_space<semaphore_mem>> -> memref<!tpu.dma_semaphore, #tpu.memory_space<semaphore_mem>>
    tpu.enqueue_dma source(%172 : memref<1x32xf32, #tpu.memory_space<any>>) target(%173 : memref<1x32xf32, #tpu.memory_space<vmem>>) target_semaphore(%175 : memref<!tpu.dma_semaphore, #tpu.memory_space<semaphore_mem>>)
    %c11_i32 = arith.constant 11 : i32
    %c8_i32_146 = arith.constant 8 : i32
    %c0_i32_147 = arith.constant 0 : i32
    %176 = arith.cmpi eq, %c8_i32_146, %c0_i32_147 : i32
    %c1_i32_148 = arith.constant 1 : i32
    %177 = arith.select %176, %c1_i32_148, %c8_i32_146 : i32
    %178 = arith.remsi %c11_i32, %177 : i32
    %c0_i32_149 = arith.constant 0 : i32
    %179 = arith.cmpi ne, %178, %c0_i32_149 : i32
    %c0_i32_150 = arith.constant 0 : i32
    %180 = arith.cmpi slt, %178, %c0_i32_150 : i32
    %c0_i32_151 = arith.constant 0 : i32
    %181 = arith.cmpi slt, %177, %c0_i32_151 : i32
    %182 = arith.xori %180, %181 : i1
    %183 = arith.andi %182, %179 : i1
    %184 = arith.addi %178, %177 : i32
    %185 = arith.select %183, %184, %178 : i32
    %c0_i32_152 = arith.constant 0 : i32
    %c0_i32_153 = arith.constant 0 : i32
    %c0_i32_154 = arith.constant 0 : i32
    %186 = tpu.memref_slice %arg2[%c0_i32_153, %c0_i32_154] : memref<64x32xf32, #tpu.memory_space<any>> -> memref<1x32xf32, #tpu.memory_space<any>>
    %c0_i32_155 = arith.constant 0 : i32
    %c0_i32_156 = arith.constant 0 : i32
    %187 = tpu.memref_slice %arg4[%c0_i32_155, %c0_i32_156] : memref<16x32xf32, #tpu.memory_space<vmem>> -> memref<1x32xf32, #tpu.memory_space<vmem>>
    %188 = tpu.memref_slice %arg6[%c0_i32_152, %185] : memref<2x8x!tpu.dma_semaphore, #tpu.memory_space<semaphore_mem>> -> memref<1x1x!tpu.dma_semaphore, #tpu.memory_space<semaphore_mem>>
    %189 = tpu.memref_squeeze %188 : memref<1x1x!tpu.dma_semaphore, #tpu.memory_space<semaphore_mem>> -> memref<!tpu.dma_semaphore, #tpu.memory_space<semaphore_mem>>
    tpu.wait_dma2 semaphore(%189 : memref<!tpu.dma_semaphore, #tpu.memory_space<semaphore_mem>>) src(%186 : memref<1x32xf32, #tpu.memory_space<any>>) dst(%187 : memref<1x32xf32, #tpu.memory_space<vmem>>)
    %c1_i32_157 = arith.constant 1 : i32
    %c0_i32_158 = arith.constant 0 : i32
    %c0_i32_159 = arith.constant 0 : i32
    %190 = tpu.memref_slice %arg3[%c0_i32_158, %c0_i32_159] : memref<64x32xf32, #tpu.memory_space<any>> -> memref<1x32xf32, #tpu.memory_space<any>>
    %c0_i32_160 = arith.constant 0 : i32
    %c0_i32_161 = arith.constant 0 : i32
    %191 = tpu.memref_slice %arg5[%c0_i32_160, %c0_i32_161] : memref<16x32xf32, #tpu.memory_space<vmem>> -> memref<1x32xf32, #tpu.memory_space<vmem>>
    %192 = tpu.memref_slice %arg6[%c1_i32_157, %185] : memref<2x8x!tpu.dma_semaphore, #tpu.memory_space<semaphore_mem>> -> memref<1x1x!tpu.dma_semaphore, #tpu.memory_space<semaphore_mem>>
    %193 = tpu.memref_squeeze %192 : memref<1x1x!tpu.dma_semaphore, #tpu.memory_space<semaphore_mem>> -> memref<!tpu.dma_semaphore, #tpu.memory_space<semaphore_mem>>
    tpu.wait_dma2 semaphore(%193 : memref<!tpu.dma_semaphore, #tpu.memory_space<semaphore_mem>>) src(%190 : memref<1x32xf32, #tpu.memory_space<any>>) dst(%191 : memref<1x32xf32, #tpu.memory_space<vmem>>)
    %194 = arith.addi %0, %c11_i32 : i32
    %195 = arith.index_cast %194 : i32 to index
    %196 = memref.load %arg1[%195] : memref<16xi32, #tpu.memory_space<smem>>
    %c0_i32_162 = arith.constant 0 : i32
    %c0_i32_163 = arith.constant 0 : i32
    %197 = tpu.memref_slice %arg2[%196, %c0_i32_163] : memref<64x32xf32, #tpu.memory_space<any>> -> memref<1x32xf32, #tpu.memory_space<any>>
    %c0_i32_164 = arith.constant 0 : i32
    %198 = tpu.memref_slice %arg4[%c11_i32, %c0_i32_164] : memref<16x32xf32, #tpu.memory_space<vmem>> -> memref<1x32xf32, #tpu.memory_space<vmem>>
    %199 = tpu.memref_slice %arg6[%c0_i32_162, %185] : memref<2x8x!tpu.dma_semaphore, #tpu.memory_space<semaphore_mem>> -> memref<1x1x!tpu.dma_semaphore, #tpu.memory_space<semaphore_mem>>
    %200 = tpu.memref_squeeze %199 : memref<1x1x!tpu.dma_semaphore, #tpu.memory_space<semaphore_mem>> -> memref<!tpu.dma_semaphore, #tpu.memory_space<semaphore_mem>>
    tpu.enqueue_dma source(%197 : memref<1x32xf32, #tpu.memory_space<any>>) target(%198 : memref<1x32xf32, #tpu.memory_space<vmem>>) target_semaphore(%200 : memref<!tpu.dma_semaphore, #tpu.memory_space<semaphore_mem>>)
    %c1_i32_165 = arith.constant 1 : i32
    %c0_i32_166 = arith.constant 0 : i32
    %201 = tpu.memref_slice %arg3[%196, %c0_i32_166] : memref<64x32xf32, #tpu.memory_space<any>> -> memref<1x32xf32, #tpu.memory_space<any>>
    %c0_i32_167 = arith.constant 0 : i32
    %202 = tpu.memref_slice %arg5[%c11_i32, %c0_i32_167] : memref<16x32xf32, #tpu.memory_space<vmem>> -> memref<1x32xf32, #tpu.memory_space<vmem>>
    %203 = tpu.memref_slice %arg6[%c1_i32_165, %185] : memref<2x8x!tpu.dma_semaphore, #tpu.memory_space<semaphore_mem>> -> memref<1x1x!tpu.dma_semaphore, #tpu.memory_space<semaphore_mem>>
    %204 = tpu.memref_squeeze %203 : memref<1x1x!tpu.dma_semaphore, #tpu.memory_space<semaphore_mem>> -> memref<!tpu.dma_semaphore, #tpu.memory_space<semaphore_mem>>
    tpu.enqueue_dma source(%201 : memref<1x32xf32, #tpu.memory_space<any>>) target(%202 : memref<1x32xf32, #tpu.memory_space<vmem>>) target_semaphore(%204 : memref<!tpu.dma_semaphore, #tpu.memory_space<semaphore_mem>>)
    %c12_i32 = arith.constant 12 : i32
    %c8_i32_168 = arith.constant 8 : i32
    %c0_i32_169 = arith.constant 0 : i32
    %205 = arith.cmpi eq, %c8_i32_168, %c0_i32_169 : i32
    %c1_i32_170 = arith.constant 1 : i32
    %206 = arith.select %205, %c1_i32_170, %c8_i32_168 : i32
    %207 = arith.remsi %c12_i32, %206 : i32
    %c0_i32_171 = arith.constant 0 : i32
    %208 = arith.cmpi ne, %207, %c0_i32_171 : i32
    %c0_i32_172 = arith.constant 0 : i32
    %209 = arith.cmpi slt, %207, %c0_i32_172 : i32
    %c0_i32_173 = arith.constant 0 : i32
    %210 = arith.cmpi slt, %206, %c0_i32_173 : i32
    %211 = arith.xori %209, %210 : i1
    %212 = arith.andi %211, %208 : i1
    %213 = arith.addi %207, %206 : i32
    %214 = arith.select %212, %213, %207 : i32
    %c0_i32_174 = arith.constant 0 : i32
    %c0_i32_175 = arith.constant 0 : i32
    %c0_i32_176 = arith.constant 0 : i32
    %215 = tpu.memref_slice %arg2[%c0_i32_175, %c0_i32_176] : memref<64x32xf32, #tpu.memory_space<any>> -> memref<1x32xf32, #tpu.memory_space<any>>
    %c0_i32_177 = arith.constant 0 : i32
    %c0_i32_178 = arith.constant 0 : i32
    %216 = tpu.memref_slice %arg4[%c0_i32_177, %c0_i32_178] : memref<16x32xf32, #tpu.memory_space<vmem>> -> memref<1x32xf32, #tpu.memory_space<vmem>>
    %217 = tpu.memref_slice %arg6[%c0_i32_174, %214] : memref<2x8x!tpu.dma_semaphore, #tpu.memory_space<semaphore_mem>> -> memref<1x1x!tpu.dma_semaphore, #tpu.memory_space<semaphore_mem>>
    %218 = tpu.memref_squeeze %217 : memref<1x1x!tpu.dma_semaphore, #tpu.memory_space<semaphore_mem>> -> memref<!tpu.dma_semaphore, #tpu.memory_space<semaphore_mem>>
    tpu.wait_dma2 semaphore(%218 : memref<!tpu.dma_semaphore, #tpu.memory_space<semaphore_mem>>) src(%215 : memref<1x32xf32, #tpu.memory_space<any>>) dst(%216 : memref<1x32xf32, #tpu.memory_space<vmem>>)
    %c1_i32_179 = arith.constant 1 : i32
    %c0_i32_180 = arith.constant 0 : i32
    %c0_i32_181 = arith.constant 0 : i32
    %219 = tpu.memref_slice %arg3[%c0_i32_180, %c0_i32_181] : memref<64x32xf32, #tpu.memory_space<any>> -> memref<1x32xf32, #tpu.memory_space<any>>
    %c0_i32_182 = arith.constant 0 : i32
    %c0_i32_183 = arith.constant 0 : i32
    %220 = tpu.memref_slice %arg5[%c0_i32_182, %c0_i32_183] : memref<16x32xf32, #tpu.memory_space<vmem>> -> memref<1x32xf32, #tpu.memory_space<vmem>>
    %221 = tpu.memref_slice %arg6[%c1_i32_179, %214] : memref<2x8x!tpu.dma_semaphore, #tpu.memory_space<semaphore_mem>> -> memref<1x1x!tpu.dma_semaphore, #tpu.memory_space<semaphore_mem>>
    %222 = tpu.memref_squeeze %221 : memref<1x1x!tpu.dma_semaphore, #tpu.memory_space<semaphore_mem>> -> memref<!tpu.dma_semaphore, #tpu.memory_space<semaphore_mem>>
    tpu.wait_dma2 semaphore(%222 : memref<!tpu.dma_semaphore, #tpu.memory_space<semaphore_mem>>) src(%219 : memref<1x32xf32, #tpu.memory_space<any>>) dst(%220 : memref<1x32xf32, #tpu.memory_space<vmem>>)
    %223 = arith.addi %0, %c12_i32 : i32
    %224 = arith.index_cast %223 : i32 to index
    %225 = memref.load %arg1[%224] : memref<16xi32, #tpu.memory_space<smem>>
    %c0_i32_184 = arith.constant 0 : i32
    %c0_i32_185 = arith.constant 0 : i32
    %226 = tpu.memref_slice %arg2[%225, %c0_i32_185] : memref<64x32xf32, #tpu.memory_space<any>> -> memref<1x32xf32, #tpu.memory_space<any>>
    %c0_i32_186 = arith.constant 0 : i32
    %227 = tpu.memref_slice %arg4[%c12_i32, %c0_i32_186] : memref<16x32xf32, #tpu.memory_space<vmem>> -> memref<1x32xf32, #tpu.memory_space<vmem>>
    %228 = tpu.memref_slice %arg6[%c0_i32_184, %214] : memref<2x8x!tpu.dma_semaphore, #tpu.memory_space<semaphore_mem>> -> memref<1x1x!tpu.dma_semaphore, #tpu.memory_space<semaphore_mem>>
    %229 = tpu.memref_squeeze %228 : memref<1x1x!tpu.dma_semaphore, #tpu.memory_space<semaphore_mem>> -> memref<!tpu.dma_semaphore, #tpu.memory_space<semaphore_mem>>
    tpu.enqueue_dma source(%226 : memref<1x32xf32, #tpu.memory_space<any>>) target(%227 : memref<1x32xf32, #tpu.memory_space<vmem>>) target_semaphore(%229 : memref<!tpu.dma_semaphore, #tpu.memory_space<semaphore_mem>>)
    %c1_i32_187 = arith.constant 1 : i32
    %c0_i32_188 = arith.constant 0 : i32
    %230 = tpu.memref_slice %arg3[%225, %c0_i32_188] : memref<64x32xf32, #tpu.memory_space<any>> -> memref<1x32xf32, #tpu.memory_space<any>>
    %c0_i32_189 = arith.constant 0 : i32
    %231 = tpu.memref_slice %arg5[%c12_i32, %c0_i32_189] : memref<16x32xf32, #tpu.memory_space<vmem>> -> memref<1x32xf32, #tpu.memory_space<vmem>>
    %232 = tpu.memref_slice %arg6[%c1_i32_187, %214] : memref<2x8x!tpu.dma_semaphore, #tpu.memory_space<semaphore_mem>> -> memref<1x1x!tpu.dma_semaphore, #tpu.memory_space<semaphore_mem>>
    %233 = tpu.memref_squeeze %232 : memref<1x1x!tpu.dma_semaphore, #tpu.memory_space<semaphore_mem>> -> memref<!tpu.dma_semaphore, #tpu.memory_space<semaphore_mem>>
    tpu.enqueue_dma source(%230 : memref<1x32xf32, #tpu.memory_space<any>>) target(%231 : memref<1x32xf32, #tpu.memory_space<vmem>>) target_semaphore(%233 : memref<!tpu.dma_semaphore, #tpu.memory_space<semaphore_mem>>)
    %c13_i32 = arith.constant 13 : i32
    %c8_i32_190 = arith.constant 8 : i32
    %c0_i32_191 = arith.constant 0 : i32
    %234 = arith.cmpi eq, %c8_i32_190, %c0_i32_191 : i32
    %c1_i32_192 = arith.constant 1 : i32
    %235 = arith.select %234, %c1_i32_192, %c8_i32_190 : i32
    %236 = arith.remsi %c13_i32, %235 : i32
    %c0_i32_193 = arith.constant 0 : i32
    %237 = arith.cmpi ne, %236, %c0_i32_193 : i32
    %c0_i32_194 = arith.constant 0 : i32
    %238 = arith.cmpi slt, %236, %c0_i32_194 : i32
    %c0_i32_195 = arith.constant 0 : i32
    %239 = arith.cmpi slt, %235, %c0_i32_195 : i32
    %240 = arith.xori %238, %239 : i1
    %241 = arith.andi %240, %237 : i1
    %242 = arith.addi %236, %235 : i32
    %243 = arith.select %241, %242, %236 : i32
    %c0_i32_196 = arith.constant 0 : i32
    %c0_i32_197 = arith.constant 0 : i32
    %c0_i32_198 = arith.constant 0 : i32
    %244 = tpu.memref_slice %arg2[%c0_i32_197, %c0_i32_198] : memref<64x32xf32, #tpu.memory_space<any>> -> memref<1x32xf32, #tpu.memory_space<any>>
    %c0_i32_199 = arith.constant 0 : i32
    %c0_i32_200 = arith.constant 0 : i32
    %245 = tpu.memref_slice %arg4[%c0_i32_199, %c0_i32_200] : memref<16x32xf32, #tpu.memory_space<vmem>> -> memref<1x32xf32, #tpu.memory_space<vmem>>
    %246 = tpu.memref_slice %arg6[%c0_i32_196, %243] : memref<2x8x!tpu.dma_semaphore, #tpu.memory_space<semaphore_mem>> -> memref<1x1x!tpu.dma_semaphore, #tpu.memory_space<semaphore_mem>>
    %247 = tpu.memref_squeeze %246 : memref<1x1x!tpu.dma_semaphore, #tpu.memory_space<semaphore_mem>> -> memref<!tpu.dma_semaphore, #tpu.memory_space<semaphore_mem>>
    tpu.wait_dma2 semaphore(%247 : memref<!tpu.dma_semaphore, #tpu.memory_space<semaphore_mem>>) src(%244 : memref<1x32xf32, #tpu.memory_space<any>>) dst(%245 : memref<1x32xf32, #tpu.memory_space<vmem>>)
    %c1_i32_201 = arith.constant 1 : i32
    %c0_i32_202 = arith.constant 0 : i32
    %c0_i32_203 = arith.constant 0 : i32
    %248 = tpu.memref_slice %arg3[%c0_i32_202, %c0_i32_203] : memref<64x32xf32, #tpu.memory_space<any>> -> memref<1x32xf32, #tpu.memory_space<any>>
    %c0_i32_204 = arith.constant 0 : i32
    %c0_i32_205 = arith.constant 0 : i32
    %249 = tpu.memref_slice %arg5[%c0_i32_204, %c0_i32_205] : memref<16x32xf32, #tpu.memory_space<vmem>> -> memref<1x32xf32, #tpu.memory_space<vmem>>
    %250 = tpu.memref_slice %arg6[%c1_i32_201, %243] : memref<2x8x!tpu.dma_semaphore, #tpu.memory_space<semaphore_mem>> -> memref<1x1x!tpu.dma_semaphore, #tpu.memory_space<semaphore_mem>>
    %251 = tpu.memref_squeeze %250 : memref<1x1x!tpu.dma_semaphore, #tpu.memory_space<semaphore_mem>> -> memref<!tpu.dma_semaphore, #tpu.memory_space<semaphore_mem>>
    tpu.wait_dma2 semaphore(%251 : memref<!tpu.dma_semaphore, #tpu.memory_space<semaphore_mem>>) src(%248 : memref<1x32xf32, #tpu.memory_space<any>>) dst(%249 : memref<1x32xf32, #tpu.memory_space<vmem>>)
    %252 = arith.addi %0, %c13_i32 : i32
    %253 = arith.index_cast %252 : i32 to index
    %254 = memref.load %arg1[%253] : memref<16xi32, #tpu.memory_space<smem>>
    %c0_i32_206 = arith.constant 0 : i32
    %c0_i32_207 = arith.constant 0 : i32
    %255 = tpu.memref_slice %arg2[%254, %c0_i32_207] : memref<64x32xf32, #tpu.memory_space<any>> -> memref<1x32xf32, #tpu.memory_space<any>>
    %c0_i32_208 = arith.constant 0 : i32
    %256 = tpu.memref_slice %arg4[%c13_i32, %c0_i32_208] : memref<16x32xf32, #tpu.memory_space<vmem>> -> memref<1x32xf32, #tpu.memory_space<vmem>>
    %257 = tpu.memref_slice %arg6[%c0_i32_206, %243] : memref<2x8x!tpu.dma_semaphore, #tpu.memory_space<semaphore_mem>> -> memref<1x1x!tpu.dma_semaphore, #tpu.memory_space<semaphore_mem>>
    %258 = tpu.memref_squeeze %257 : memref<1x1x!tpu.dma_semaphore, #tpu.memory_space<semaphore_mem>> -> memref<!tpu.dma_semaphore, #tpu.memory_space<semaphore_mem>>
    tpu.enqueue_dma source(%255 : memref<1x32xf32, #tpu.memory_space<any>>) target(%256 : memref<1x32xf32, #tpu.memory_space<vmem>>) target_semaphore(%258 : memref<!tpu.dma_semaphore, #tpu.memory_space<semaphore_mem>>)
    %c1_i32_209 = arith.constant 1 : i32
    %c0_i32_210 = arith.constant 0 : i32
    %259 = tpu.memref_slice %arg3[%254, %c0_i32_210] : memref<64x32xf32, #tpu.memory_space<any>> -> memref<1x32xf32, #tpu.memory_space<any>>
    %c0_i32_211 = arith.constant 0 : i32
    %260 = tpu.memref_slice %arg5[%c13_i32, %c0_i32_211] : memref<16x32xf32, #tpu.memory_space<vmem>> -> memref<1x32xf32, #tpu.memory_space<vmem>>
    %261 = tpu.memref_slice %arg6[%c1_i32_209, %243] : memref<2x8x!tpu.dma_semaphore, #tpu.memory_space<semaphore_mem>> -> memref<1x1x!tpu.dma_semaphore, #tpu.memory_space<semaphore_mem>>
    %262 = tpu.memref_squeeze %261 : memref<1x1x!tpu.dma_semaphore, #tpu.memory_space<semaphore_mem>> -> memref<!tpu.dma_semaphore, #tpu.memory_space<semaphore_mem>>
    tpu.enqueue_dma source(%259 : memref<1x32xf32, #tpu.memory_space<any>>) target(%260 : memref<1x32xf32, #tpu.memory_space<vmem>>) target_semaphore(%262 : memref<!tpu.dma_semaphore, #tpu.memory_space<semaphore_mem>>)
    %c14_i32 = arith.constant 14 : i32
    %c8_i32_212 = arith.constant 8 : i32
    %c0_i32_213 = arith.constant 0 : i32
    %263 = arith.cmpi eq, %c8_i32_212, %c0_i32_213 : i32
    %c1_i32_214 = arith.constant 1 : i32
    %264 = arith.select %263, %c1_i32_214, %c8_i32_212 : i32
    %265 = arith.remsi %c14_i32, %264 : i32
    %c0_i32_215 = arith.constant 0 : i32
    %266 = arith.cmpi ne, %265, %c0_i32_215 : i32
    %c0_i32_216 = arith.constant 0 : i32
    %267 = arith.cmpi slt, %265, %c0_i32_216 : i32
    %c0_i32_217 = arith.constant 0 : i32
    %268 = arith.cmpi slt, %264, %c0_i32_217 : i32
    %269 = arith.xori %267, %268 : i1
    %270 = arith.andi %269, %266 : i1
    %271 = arith.addi %265, %264 : i32
    %272 = arith.select %270, %271, %265 : i32
    %c0_i32_218 = arith.constant 0 : i32
    %c0_i32_219 = arith.constant 0 : i32
    %c0_i32_220 = arith.constant 0 : i32
    %273 = tpu.memref_slice %arg2[%c0_i32_219, %c0_i32_220] : memref<64x32xf32, #tpu.memory_space<any>> -> memref<1x32xf32, #tpu.memory_space<any>>
    %c0_i32_221 = arith.constant 0 : i32
    %c0_i32_222 = arith.constant 0 : i32
    %274 = tpu.memref_slice %arg4[%c0_i32_221, %c0_i32_222] : memref<16x32xf32, #tpu.memory_space<vmem>> -> memref<1x32xf32, #tpu.memory_space<vmem>>
    %275 = tpu.memref_slice %arg6[%c0_i32_218, %272] : memref<2x8x!tpu.dma_semaphore, #tpu.memory_space<semaphore_mem>> -> memref<1x1x!tpu.dma_semaphore, #tpu.memory_space<semaphore_mem>>
    %276 = tpu.memref_squeeze %275 : memref<1x1x!tpu.dma_semaphore, #tpu.memory_space<semaphore_mem>> -> memref<!tpu.dma_semaphore, #tpu.memory_space<semaphore_mem>>
    tpu.wait_dma2 semaphore(%276 : memref<!tpu.dma_semaphore, #tpu.memory_space<semaphore_mem>>) src(%273 : memref<1x32xf32, #tpu.memory_space<any>>) dst(%274 : memref<1x32xf32, #tpu.memory_space<vmem>>)
    %c1_i32_223 = arith.constant 1 : i32
    %c0_i32_224 = arith.constant 0 : i32
    %c0_i32_225 = arith.constant 0 : i32
    %277 = tpu.memref_slice %arg3[%c0_i32_224, %c0_i32_225] : memref<64x32xf32, #tpu.memory_space<any>> -> memref<1x32xf32, #tpu.memory_space<any>>
    %c0_i32_226 = arith.constant 0 : i32
    %c0_i32_227 = arith.constant 0 : i32
    %278 = tpu.memref_slice %arg5[%c0_i32_226, %c0_i32_227] : memref<16x32xf32, #tpu.memory_space<vmem>> -> memref<1x32xf32, #tpu.memory_space<vmem>>
    %279 = tpu.memref_slice %arg6[%c1_i32_223, %272] : memref<2x8x!tpu.dma_semaphore, #tpu.memory_space<semaphore_mem>> -> memref<1x1x!tpu.dma_semaphore, #tpu.memory_space<semaphore_mem>>
    %280 = tpu.memref_squeeze %279 : memref<1x1x!tpu.dma_semaphore, #tpu.memory_space<semaphore_mem>> -> memref<!tpu.dma_semaphore, #tpu.memory_space<semaphore_mem>>
    tpu.wait_dma2 semaphore(%280 : memref<!tpu.dma_semaphore, #tpu.memory_space<semaphore_mem>>) src(%277 : memref<1x32xf32, #tpu.memory_space<any>>) dst(%278 : memref<1x32xf32, #tpu.memory_space<vmem>>)
    %281 = arith.addi %0, %c14_i32 : i32
    %282 = arith.index_cast %281 : i32 to index
    %283 = memref.load %arg1[%282] : memref<16xi32, #tpu.memory_space<smem>>
    %c0_i32_228 = arith.constant 0 : i32
    %c0_i32_229 = arith.constant 0 : i32
    %284 = tpu.memref_slice %arg2[%283, %c0_i32_229] : memref<64x32xf32, #tpu.memory_space<any>> -> memref<1x32xf32, #tpu.memory_space<any>>
    %c0_i32_230 = arith.constant 0 : i32
    %285 = tpu.memref_slice %arg4[%c14_i32, %c0_i32_230] : memref<16x32xf32, #tpu.memory_space<vmem>> -> memref<1x32xf32, #tpu.memory_space<vmem>>
    %286 = tpu.memref_slice %arg6[%c0_i32_228, %272] : memref<2x8x!tpu.dma_semaphore, #tpu.memory_space<semaphore_mem>> -> memref<1x1x!tpu.dma_semaphore, #tpu.memory_space<semaphore_mem>>
    %287 = tpu.memref_squeeze %286 : memref<1x1x!tpu.dma_semaphore, #tpu.memory_space<semaphore_mem>> -> memref<!tpu.dma_semaphore, #tpu.memory_space<semaphore_mem>>
    tpu.enqueue_dma source(%284 : memref<1x32xf32, #tpu.memory_space<any>>) target(%285 : memref<1x32xf32, #tpu.memory_space<vmem>>) target_semaphore(%287 : memref<!tpu.dma_semaphore, #tpu.memory_space<semaphore_mem>>)
    %c1_i32_231 = arith.constant 1 : i32
    %c0_i32_232 = arith.constant 0 : i32
    %288 = tpu.memref_slice %arg3[%283, %c0_i32_232] : memref<64x32xf32, #tpu.memory_space<any>> -> memref<1x32xf32, #tpu.memory_space<any>>
    %c0_i32_233 = arith.constant 0 : i32
    %289 = tpu.memref_slice %arg5[%c14_i32, %c0_i32_233] : memref<16x32xf32, #tpu.memory_space<vmem>> -> memref<1x32xf32, #tpu.memory_space<vmem>>
    %290 = tpu.memref_slice %arg6[%c1_i32_231, %272] : memref<2x8x!tpu.dma_semaphore, #tpu.memory_space<semaphore_mem>> -> memref<1x1x!tpu.dma_semaphore, #tpu.memory_space<semaphore_mem>>
    %291 = tpu.memref_squeeze %290 : memref<1x1x!tpu.dma_semaphore, #tpu.memory_space<semaphore_mem>> -> memref<!tpu.dma_semaphore, #tpu.memory_space<semaphore_mem>>
    tpu.enqueue_dma source(%288 : memref<1x32xf32, #tpu.memory_space<any>>) target(%289 : memref<1x32xf32, #tpu.memory_space<vmem>>) target_semaphore(%291 : memref<!tpu.dma_semaphore, #tpu.memory_space<semaphore_mem>>)
    %c15_i32 = arith.constant 15 : i32
    %c8_i32_234 = arith.constant 8 : i32
    %c0_i32_235 = arith.constant 0 : i32
    %292 = arith.cmpi eq, %c8_i32_234, %c0_i32_235 : i32
    %c1_i32_236 = arith.constant 1 : i32
    %293 = arith.select %292, %c1_i32_236, %c8_i32_234 : i32
    %294 = arith.remsi %c15_i32, %293 : i32
    %c0_i32_237 = arith.constant 0 : i32
    %295 = arith.cmpi ne, %294, %c0_i32_237 : i32
    %c0_i32_238 = arith.constant 0 : i32
    %296 = arith.cmpi slt, %294, %c0_i32_238 : i32
    %c0_i32_239 = arith.constant 0 : i32
    %297 = arith.cmpi slt, %293, %c0_i32_239 : i32
    %298 = arith.xori %296, %297 : i1
    %299 = arith.andi %298, %295 : i1
    %300 = arith.addi %294, %293 : i32
    %301 = arith.select %299, %300, %294 : i32
    %c0_i32_240 = arith.constant 0 : i32
    %c0_i32_241 = arith.constant 0 : i32
    %c0_i32_242 = arith.constant 0 : i32
    %302 = tpu.memref_slice %arg2[%c0_i32_241, %c0_i32_242] : memref<64x32xf32, #tpu.memory_space<any>> -> memref<1x32xf32, #tpu.memory_space<any>>
    %c0_i32_243 = arith.constant 0 : i32
    %c0_i32_244 = arith.constant 0 : i32
    %303 = tpu.memref_slice %arg4[%c0_i32_243, %c0_i32_244] : memref<16x32xf32, #tpu.memory_space<vmem>> -> memref<1x32xf32, #tpu.memory_space<vmem>>
    %304 = tpu.memref_slice %arg6[%c0_i32_240, %301] : memref<2x8x!tpu.dma_semaphore, #tpu.memory_space<semaphore_mem>> -> memref<1x1x!tpu.dma_semaphore, #tpu.memory_space<semaphore_mem>>
    %305 = tpu.memref_squeeze %304 : memref<1x1x!tpu.dma_semaphore, #tpu.memory_space<semaphore_mem>> -> memref<!tpu.dma_semaphore, #tpu.memory_space<semaphore_mem>>
    tpu.wait_dma2 semaphore(%305 : memref<!tpu.dma_semaphore, #tpu.memory_space<semaphore_mem>>) src(%302 : memref<1x32xf32, #tpu.memory_space<any>>) dst(%303 : memref<1x32xf32, #tpu.memory_space<vmem>>)
    %c1_i32_245 = arith.constant 1 : i32
    %c0_i32_246 = arith.constant 0 : i32
    %c0_i32_247 = arith.constant 0 : i32
    %306 = tpu.memref_slice %arg3[%c0_i32_246, %c0_i32_247] : memref<64x32xf32, #tpu.memory_space<any>> -> memref<1x32xf32, #tpu.memory_space<any>>
    %c0_i32_248 = arith.constant 0 : i32
    %c0_i32_249 = arith.constant 0 : i32
    %307 = tpu.memref_slice %arg5[%c0_i32_248, %c0_i32_249] : memref<16x32xf32, #tpu.memory_space<vmem>> -> memref<1x32xf32, #tpu.memory_space<vmem>>
    %308 = tpu.memref_slice %arg6[%c1_i32_245, %301] : memref<2x8x!tpu.dma_semaphore, #tpu.memory_space<semaphore_mem>> -> memref<1x1x!tpu.dma_semaphore, #tpu.memory_space<semaphore_mem>>
    %309 = tpu.memref_squeeze %308 : memref<1x1x!tpu.dma_semaphore, #tpu.memory_space<semaphore_mem>> -> memref<!tpu.dma_semaphore, #tpu.memory_space<semaphore_mem>>
    tpu.wait_dma2 semaphore(%309 : memref<!tpu.dma_semaphore, #tpu.memory_space<semaphore_mem>>) src(%306 : memref<1x32xf32, #tpu.memory_space<any>>) dst(%307 : memref<1x32xf32, #tpu.memory_space<vmem>>)
    %310 = arith.addi %0, %c15_i32 : i32
    %311 = arith.index_cast %310 : i32 to index
    %312 = memref.load %arg1[%311] : memref<16xi32, #tpu.memory_space<smem>>
    %c0_i32_250 = arith.constant 0 : i32
    %c0_i32_251 = arith.constant 0 : i32
    %313 = tpu.memref_slice %arg2[%312, %c0_i32_251] : memref<64x32xf32, #tpu.memory_space<any>> -> memref<1x32xf32, #tpu.memory_space<any>>
    %c0_i32_252 = arith.constant 0 : i32
    %314 = tpu.memref_slice %arg4[%c15_i32, %c0_i32_252] : memref<16x32xf32, #tpu.memory_space<vmem>> -> memref<1x32xf32, #tpu.memory_space<vmem>>
    %315 = tpu.memref_slice %arg6[%c0_i32_250, %301] : memref<2x8x!tpu.dma_semaphore, #tpu.memory_space<semaphore_mem>> -> memref<1x1x!tpu.dma_semaphore, #tpu.memory_space<semaphore_mem>>
    %316 = tpu.memref_squeeze %315 : memref<1x1x!tpu.dma_semaphore, #tpu.memory_space<semaphore_mem>> -> memref<!tpu.dma_semaphore, #tpu.memory_space<semaphore_mem>>
    tpu.enqueue_dma source(%313 : memref<1x32xf32, #tpu.memory_space<any>>) target(%314 : memref<1x32xf32, #tpu.memory_space<vmem>>) target_semaphore(%316 : memref<!tpu.dma_semaphore, #tpu.memory_space<semaphore_mem>>)
    %c1_i32_253 = arith.constant 1 : i32
    %c0_i32_254 = arith.constant 0 : i32
    %317 = tpu.memref_slice %arg3[%312, %c0_i32_254] : memref<64x32xf32, #tpu.memory_space<any>> -> memref<1x32xf32, #tpu.memory_space<any>>
    %c0_i32_255 = arith.constant 0 : i32
    %318 = tpu.memref_slice %arg5[%c15_i32, %c0_i32_255] : memref<16x32xf32, #tpu.memory_space<vmem>> -> memref<1x32xf32, #tpu.memory_space<vmem>>
    %319 = tpu.memref_slice %arg6[%c1_i32_253, %301] : memref<2x8x!tpu.dma_semaphore, #tpu.memory_space<semaphore_mem>> -> memref<1x1x!tpu.dma_semaphore, #tpu.memory_space<semaphore_mem>>
    %320 = tpu.memref_squeeze %319 : memref<1x1x!tpu.dma_semaphore, #tpu.memory_space<semaphore_mem>> -> memref<!tpu.dma_semaphore, #tpu.memory_space<semaphore_mem>>
    tpu.enqueue_dma source(%317 : memref<1x32xf32, #tpu.memory_space<any>>) target(%318 : memref<1x32xf32, #tpu.memory_space<vmem>>) target_semaphore(%320 : memref<!tpu.dma_semaphore, #tpu.memory_space<semaphore_mem>>)
    %c8_i32_256 = arith.constant 8 : i32
    %c0_i32_257 = arith.constant 0 : i32
    %c0_i32_258 = arith.constant 0 : i32
    %c0_i32_259 = arith.constant 0 : i32
    %c0_i32_260 = arith.constant 0 : i32
    %321 = tpu.memref_slice %arg2[%c0_i32_259, %c0_i32_260] : memref<64x32xf32, #tpu.memory_space<any>> -> memref<1x32xf32, #tpu.memory_space<any>>
    %c0_i32_261 = arith.constant 0 : i32
    %c0_i32_262 = arith.constant 0 : i32
    %322 = tpu.memref_slice %arg4[%c0_i32_261, %c0_i32_262] : memref<16x32xf32, #tpu.memory_space<vmem>> -> memref<1x32xf32, #tpu.memory_space<vmem>>
    %323 = tpu.memref_slice %arg6[%c0_i32_257, %c0_i32_258] : memref<2x8x!tpu.dma_semaphore, #tpu.memory_space<semaphore_mem>> -> memref<1x1x!tpu.dma_semaphore, #tpu.memory_space<semaphore_mem>>
    %324 = tpu.memref_squeeze %323 : memref<1x1x!tpu.dma_semaphore, #tpu.memory_space<semaphore_mem>> -> memref<!tpu.dma_semaphore, #tpu.memory_space<semaphore_mem>>
    tpu.wait_dma2 semaphore(%324 : memref<!tpu.dma_semaphore, #tpu.memory_space<semaphore_mem>>) src(%321 : memref<1x32xf32, #tpu.memory_space<any>>) dst(%322 : memref<1x32xf32, #tpu.memory_space<vmem>>)
    %c1_i32_263 = arith.constant 1 : i32
    %c0_i32_264 = arith.constant 0 : i32
    %c0_i32_265 = arith.constant 0 : i32
    %c0_i32_266 = arith.constant 0 : i32
    %325 = tpu.memref_slice %arg3[%c0_i32_265, %c0_i32_266] : memref<64x32xf32, #tpu.memory_space<any>> -> memref<1x32xf32, #tpu.memory_space<any>>
    %c0_i32_267 = arith.constant 0 : i32
    %c0_i32_268 = arith.constant 0 : i32
    %326 = tpu.memref_slice %arg5[%c0_i32_267, %c0_i32_268] : memref<16x32xf32, #tpu.memory_space<vmem>> -> memref<1x32xf32, #tpu.memory_space<vmem>>
    %327 = tpu.memref_slice %arg6[%c1_i32_263, %c0_i32_264] : memref<2x8x!tpu.dma_semaphore, #tpu.memory_space<semaphore_mem>> -> memref<1x1x!tpu.dma_semaphore, #tpu.memory_space<semaphore_mem>>
    %328 = tpu.memref_squeeze %327 : memref<1x1x!tpu.dma_semaphore, #tpu.memory_space<semaphore_mem>> -> memref<!tpu.dma_semaphore, #tpu.memory_space<semaphore_mem>>
    tpu.wait_dma2 semaphore(%328 : memref<!tpu.dma_semaphore, #tpu.memory_space<semaphore_mem>>) src(%325 : memref<1x32xf32, #tpu.memory_space<any>>) dst(%326 : memref<1x32xf32, #tpu.memory_space<vmem>>)
    %c0_i32_269 = arith.constant 0 : i32
    %c1_i32_270 = arith.constant 1 : i32
    %c0_i32_271 = arith.constant 0 : i32
    %c0_i32_272 = arith.constant 0 : i32
    %329 = tpu.memref_slice %arg2[%c0_i32_271, %c0_i32_272] : memref<64x32xf32, #tpu.memory_space<any>> -> memref<1x32xf32, #tpu.memory_space<any>>
    %c0_i32_273 = arith.constant 0 : i32
    %c0_i32_274 = arith.constant 0 : i32
    %330 = tpu.memref_slice %arg4[%c0_i32_273, %c0_i32_274] : memref<16x32xf32, #tpu.memory_space<vmem>> -> memref<1x32xf32, #tpu.memory_space<vmem>>
    %331 = tpu.memref_slice %arg6[%c0_i32_269, %c1_i32_270] : memref<2x8x!tpu.dma_semaphore, #tpu.memory_space<semaphore_mem>> -> memref<1x1x!tpu.dma_semaphore, #tpu.memory_space<semaphore_mem>>
    %332 = tpu.memref_squeeze %331 : memref<1x1x!tpu.dma_semaphore, #tpu.memory_space<semaphore_mem>> -> memref<!tpu.dma_semaphore, #tpu.memory_space<semaphore_mem>>
    tpu.wait_dma2 semaphore(%332 : memref<!tpu.dma_semaphore, #tpu.memory_space<semaphore_mem>>) src(%329 : memref<1x32xf32, #tpu.memory_space<any>>) dst(%330 : memref<1x32xf32, #tpu.memory_space<vmem>>)
    %c1_i32_275 = arith.constant 1 : i32
    %c1_i32_276 = arith.constant 1 : i32
    %c0_i32_277 = arith.constant 0 : i32
    %c0_i32_278 = arith.constant 0 : i32
    %333 = tpu.memref_slice %arg3[%c0_i32_277, %c0_i32_278] : memref<64x32xf32, #tpu.memory_space<any>> -> memref<1x32xf32, #tpu.memory_space<any>>
    %c0_i32_279 = arith.constant 0 : i32
    %c0_i32_280 = arith.constant 0 : i32
    %334 = tpu.memref_slice %arg5[%c0_i32_279, %c0_i32_280] : memref<16x32xf32, #tpu.memory_space<vmem>> -> memref<1x32xf32, #tpu.memory_space<vmem>>
    %335 = tpu.memref_slice %arg6[%c1_i32_275, %c1_i32_276] : memref<2x8x!tpu.dma_semaphore, #tpu.memory_space<semaphore_mem>> -> memref<1x1x!tpu.dma_semaphore, #tpu.memory_space<semaphore_mem>>
    %336 = tpu.memref_squeeze %335 : memref<1x1x!tpu.dma_semaphore, #tpu.memory_space<semaphore_mem>> -> memref<!tpu.dma_semaphore, #tpu.memory_space<semaphore_mem>>
    tpu.wait_dma2 semaphore(%336 : memref<!tpu.dma_semaphore, #tpu.memory_space<semaphore_mem>>) src(%333 : memref<1x32xf32, #tpu.memory_space<any>>) dst(%334 : memref<1x32xf32, #tpu.memory_space<vmem>>)
    %c0_i32_281 = arith.constant 0 : i32
    %c2_i32_282 = arith.constant 2 : i32
    %c0_i32_283 = arith.constant 0 : i32
    %c0_i32_284 = arith.constant 0 : i32
    %337 = tpu.memref_slice %arg2[%c0_i32_283, %c0_i32_284] : memref<64x32xf32, #tpu.memory_space<any>> -> memref<1x32xf32, #tpu.memory_space<any>>
    %c0_i32_285 = arith.constant 0 : i32
    %c0_i32_286 = arith.constant 0 : i32
    %338 = tpu.memref_slice %arg4[%c0_i32_285, %c0_i32_286] : memref<16x32xf32, #tpu.memory_space<vmem>> -> memref<1x32xf32, #tpu.memory_space<vmem>>
    %339 = tpu.memref_slice %arg6[%c0_i32_281, %c2_i32_282] : memref<2x8x!tpu.dma_semaphore, #tpu.memory_space<semaphore_mem>> -> memref<1x1x!tpu.dma_semaphore, #tpu.memory_space<semaphore_mem>>
    %340 = tpu.memref_squeeze %339 : memref<1x1x!tpu.dma_semaphore, #tpu.memory_space<semaphore_mem>> -> memref<!tpu.dma_semaphore, #tpu.memory_space<semaphore_mem>>
    tpu.wait_dma2 semaphore(%340 : memref<!tpu.dma_semaphore, #tpu.memory_space<semaphore_mem>>) src(%337 : memref<1x32xf32, #tpu.memory_space<any>>) dst(%338 : memref<1x32xf32, #tpu.memory_space<vmem>>)
    %c1_i32_287 = arith.constant 1 : i32
    %c2_i32_288 = arith.constant 2 : i32
    %c0_i32_289 = arith.constant 0 : i32
    %c0_i32_290 = arith.constant 0 : i32
    %341 = tpu.memref_slice %arg3[%c0_i32_289, %c0_i32_290] : memref<64x32xf32, #tpu.memory_space<any>> -> memref<1x32xf32, #tpu.memory_space<any>>
    %c0_i32_291 = arith.constant 0 : i32
    %c0_i32_292 = arith.constant 0 : i32
    %342 = tpu.memref_slice %arg5[%c0_i32_291, %c0_i32_292] : memref<16x32xf32, #tpu.memory_space<vmem>> -> memref<1x32xf32, #tpu.memory_space<vmem>>
    %343 = tpu.memref_slice %arg6[%c1_i32_287, %c2_i32_288] : memref<2x8x!tpu.dma_semaphore, #tpu.memory_space<semaphore_mem>> -> memref<1x1x!tpu.dma_semaphore, #tpu.memory_space<semaphore_mem>>
    %344 = tpu.memref_squeeze %343 : memref<1x1x!tpu.dma_semaphore, #tpu.memory_space<semaphore_mem>> -> memref<!tpu.dma_semaphore, #tpu.memory_space<semaphore_mem>>
    tpu.wait_dma2 semaphore(%344 : memref<!tpu.dma_semaphore, #tpu.memory_space<semaphore_mem>>) src(%341 : memref<1x32xf32, #tpu.memory_space<any>>) dst(%342 : memref<1x32xf32, #tpu.memory_space<vmem>>)
    %c0_i32_293 = arith.constant 0 : i32
    %c3_i32_294 = arith.constant 3 : i32
    %c0_i32_295 = arith.constant 0 : i32
    %c0_i32_296 = arith.constant 0 : i32
    %345 = tpu.memref_slice %arg2[%c0_i32_295, %c0_i32_296] : memref<64x32xf32, #tpu.memory_space<any>> -> memref<1x32xf32, #tpu.memory_space<any>>
    %c0_i32_297 = arith.constant 0 : i32
    %c0_i32_298 = arith.constant 0 : i32
    %346 = tpu.memref_slice %arg4[%c0_i32_297, %c0_i32_298] : memref<16x32xf32, #tpu.memory_space<vmem>> -> memref<1x32xf32, #tpu.memory_space<vmem>>
    %347 = tpu.memref_slice %arg6[%c0_i32_293, %c3_i32_294] : memref<2x8x!tpu.dma_semaphore, #tpu.memory_space<semaphore_mem>> -> memref<1x1x!tpu.dma_semaphore, #tpu.memory_space<semaphore_mem>>
    %348 = tpu.memref_squeeze %347 : memref<1x1x!tpu.dma_semaphore, #tpu.memory_space<semaphore_mem>> -> memref<!tpu.dma_semaphore, #tpu.memory_space<semaphore_mem>>
    tpu.wait_dma2 semaphore(%348 : memref<!tpu.dma_semaphore, #tpu.memory_space<semaphore_mem>>) src(%345 : memref<1x32xf32, #tpu.memory_space<any>>) dst(%346 : memref<1x32xf32, #tpu.memory_space<vmem>>)
    %c1_i32_299 = arith.constant 1 : i32
    %c3_i32_300 = arith.constant 3 : i32
    %c0_i32_301 = arith.constant 0 : i32
    %c0_i32_302 = arith.constant 0 : i32
    %349 = tpu.memref_slice %arg3[%c0_i32_301, %c0_i32_302] : memref<64x32xf32, #tpu.memory_space<any>> -> memref<1x32xf32, #tpu.memory_space<any>>
    %c0_i32_303 = arith.constant 0 : i32
    %c0_i32_304 = arith.constant 0 : i32
    %350 = tpu.memref_slice %arg5[%c0_i32_303, %c0_i32_304] : memref<16x32xf32, #tpu.memory_space<vmem>> -> memref<1x32xf32, #tpu.memory_space<vmem>>
    %351 = tpu.memref_slice %arg6[%c1_i32_299, %c3_i32_300] : memref<2x8x!tpu.dma_semaphore, #tpu.memory_space<semaphore_mem>> -> memref<1x1x!tpu.dma_semaphore, #tpu.memory_space<semaphore_mem>>
    %352 = tpu.memref_squeeze %351 : memref<1x1x!tpu.dma_semaphore, #tpu.memory_space<semaphore_mem>> -> memref<!tpu.dma_semaphore, #tpu.memory_space<semaphore_mem>>
    tpu.wait_dma2 semaphore(%352 : memref<!tpu.dma_semaphore, #tpu.memory_space<semaphore_mem>>) src(%349 : memref<1x32xf32, #tpu.memory_space<any>>) dst(%350 : memref<1x32xf32, #tpu.memory_space<vmem>>)
    %c0_i32_305 = arith.constant 0 : i32
    %c4_i32_306 = arith.constant 4 : i32
    %c0_i32_307 = arith.constant 0 : i32
    %c0_i32_308 = arith.constant 0 : i32
    %353 = tpu.memref_slice %arg2[%c0_i32_307, %c0_i32_308] : memref<64x32xf32, #tpu.memory_space<any>> -> memref<1x32xf32, #tpu.memory_space<any>>
    %c0_i32_309 = arith.constant 0 : i32
    %c0_i32_310 = arith.constant 0 : i32
    %354 = tpu.memref_slice %arg4[%c0_i32_309, %c0_i32_310] : memref<16x32xf32, #tpu.memory_space<vmem>> -> memref<1x32xf32, #tpu.memory_space<vmem>>
    %355 = tpu.memref_slice %arg6[%c0_i32_305, %c4_i32_306] : memref<2x8x!tpu.dma_semaphore, #tpu.memory_space<semaphore_mem>> -> memref<1x1x!tpu.dma_semaphore, #tpu.memory_space<semaphore_mem>>
    %356 = tpu.memref_squeeze %355 : memref<1x1x!tpu.dma_semaphore, #tpu.memory_space<semaphore_mem>> -> memref<!tpu.dma_semaphore, #tpu.memory_space<semaphore_mem>>
    tpu.wait_dma2 semaphore(%356 : memref<!tpu.dma_semaphore, #tpu.memory_space<semaphore_mem>>) src(%353 : memref<1x32xf32, #tpu.memory_space<any>>) dst(%354 : memref<1x32xf32, #tpu.memory_space<vmem>>)
    %c1_i32_311 = arith.constant 1 : i32
    %c4_i32_312 = arith.constant 4 : i32
    %c0_i32_313 = arith.constant 0 : i32
    %c0_i32_314 = arith.constant 0 : i32
    %357 = tpu.memref_slice %arg3[%c0_i32_313, %c0_i32_314] : memref<64x32xf32, #tpu.memory_space<any>> -> memref<1x32xf32, #tpu.memory_space<any>>
    %c0_i32_315 = arith.constant 0 : i32
    %c0_i32_316 = arith.constant 0 : i32
    %358 = tpu.memref_slice %arg5[%c0_i32_315, %c0_i32_316] : memref<16x32xf32, #tpu.memory_space<vmem>> -> memref<1x32xf32, #tpu.memory_space<vmem>>
    %359 = tpu.memref_slice %arg6[%c1_i32_311, %c4_i32_312] : memref<2x8x!tpu.dma_semaphore, #tpu.memory_space<semaphore_mem>> -> memref<1x1x!tpu.dma_semaphore, #tpu.memory_space<semaphore_mem>>
    %360 = tpu.memref_squeeze %359 : memref<1x1x!tpu.dma_semaphore, #tpu.memory_space<semaphore_mem>> -> memref<!tpu.dma_semaphore, #tpu.memory_space<semaphore_mem>>
    tpu.wait_dma2 semaphore(%360 : memref<!tpu.dma_semaphore, #tpu.memory_space<semaphore_mem>>) src(%357 : memref<1x32xf32, #tpu.memory_space<any>>) dst(%358 : memref<1x32xf32, #tpu.memory_space<vmem>>)
    %c0_i32_317 = arith.constant 0 : i32
    %c5_i32_318 = arith.constant 5 : i32
    %c0_i32_319 = arith.constant 0 : i32
    %c0_i32_320 = arith.constant 0 : i32
    %361 = tpu.memref_slice %arg2[%c0_i32_319, %c0_i32_320] : memref<64x32xf32, #tpu.memory_space<any>> -> memref<1x32xf32, #tpu.memory_space<any>>
    %c0_i32_321 = arith.constant 0 : i32
    %c0_i32_322 = arith.constant 0 : i32
    %362 = tpu.memref_slice %arg4[%c0_i32_321, %c0_i32_322] : memref<16x32xf32, #tpu.memory_space<vmem>> -> memref<1x32xf32, #tpu.memory_space<vmem>>
    %363 = tpu.memref_slice %arg6[%c0_i32_317, %c5_i32_318] : memref<2x8x!tpu.dma_semaphore, #tpu.memory_space<semaphore_mem>> -> memref<1x1x!tpu.dma_semaphore, #tpu.memory_space<semaphore_mem>>
    %364 = tpu.memref_squeeze %363 : memref<1x1x!tpu.dma_semaphore, #tpu.memory_space<semaphore_mem>> -> memref<!tpu.dma_semaphore, #tpu.memory_space<semaphore_mem>>
    tpu.wait_dma2 semaphore(%364 : memref<!tpu.dma_semaphore, #tpu.memory_space<semaphore_mem>>) src(%361 : memref<1x32xf32, #tpu.memory_space<any>>) dst(%362 : memref<1x32xf32, #tpu.memory_space<vmem>>)
    %c1_i32_323 = arith.constant 1 : i32
    %c5_i32_324 = arith.constant 5 : i32
    %c0_i32_325 = arith.constant 0 : i32
    %c0_i32_326 = arith.constant 0 : i32
    %365 = tpu.memref_slice %arg3[%c0_i32_325, %c0_i32_326] : memref<64x32xf32, #tpu.memory_space<any>> -> memref<1x32xf32, #tpu.memory_space<any>>
    %c0_i32_327 = arith.constant 0 : i32
    %c0_i32_328 = arith.constant 0 : i32
    %366 = tpu.memref_slice %arg5[%c0_i32_327, %c0_i32_328] : memref<16x32xf32, #tpu.memory_space<vmem>> -> memref<1x32xf32, #tpu.memory_space<vmem>>
    %367 = tpu.memref_slice %arg6[%c1_i32_323, %c5_i32_324] : memref<2x8x!tpu.dma_semaphore, #tpu.memory_space<semaphore_mem>> -> memref<1x1x!tpu.dma_semaphore, #tpu.memory_space<semaphore_mem>>
    %368 = tpu.memref_squeeze %367 : memref<1x1x!tpu.dma_semaphore, #tpu.memory_space<semaphore_mem>> -> memref<!tpu.dma_semaphore, #tpu.memory_space<semaphore_mem>>
    tpu.wait_dma2 semaphore(%368 : memref<!tpu.dma_semaphore, #tpu.memory_space<semaphore_mem>>) src(%365 : memref<1x32xf32, #tpu.memory_space<any>>) dst(%366 : memref<1x32xf32, #tpu.memory_space<vmem>>)
    %c0_i32_329 = arith.constant 0 : i32
    %c6_i32_330 = arith.constant 6 : i32
    %c0_i32_331 = arith.constant 0 : i32
    %c0_i32_332 = arith.constant 0 : i32
    %369 = tpu.memref_slice %arg2[%c0_i32_331, %c0_i32_332] : memref<64x32xf32, #tpu.memory_space<any>> -> memref<1x32xf32, #tpu.memory_space<any>>
    %c0_i32_333 = arith.constant 0 : i32
    %c0_i32_334 = arith.constant 0 : i32
    %370 = tpu.memref_slice %arg4[%c0_i32_333, %c0_i32_334] : memref<16x32xf32, #tpu.memory_space<vmem>> -> memref<1x32xf32, #tpu.memory_space<vmem>>
    %371 = tpu.memref_slice %arg6[%c0_i32_329, %c6_i32_330] : memref<2x8x!tpu.dma_semaphore, #tpu.memory_space<semaphore_mem>> -> memref<1x1x!tpu.dma_semaphore, #tpu.memory_space<semaphore_mem>>
    %372 = tpu.memref_squeeze %371 : memref<1x1x!tpu.dma_semaphore, #tpu.memory_space<semaphore_mem>> -> memref<!tpu.dma_semaphore, #tpu.memory_space<semaphore_mem>>
    tpu.wait_dma2 semaphore(%372 : memref<!tpu.dma_semaphore, #tpu.memory_space<semaphore_mem>>) src(%369 : memref<1x32xf32, #tpu.memory_space<any>>) dst(%370 : memref<1x32xf32, #tpu.memory_space<vmem>>)
    %c1_i32_335 = arith.constant 1 : i32
    %c6_i32_336 = arith.constant 6 : i32
    %c0_i32_337 = arith.constant 0 : i32
    %c0_i32_338 = arith.constant 0 : i32
    %373 = tpu.memref_slice %arg3[%c0_i32_337, %c0_i32_338] : memref<64x32xf32, #tpu.memory_space<any>> -> memref<1x32xf32, #tpu.memory_space<any>>
    %c0_i32_339 = arith.constant 0 : i32
    %c0_i32_340 = arith.constant 0 : i32
    %374 = tpu.memref_slice %arg5[%c0_i32_339, %c0_i32_340] : memref<16x32xf32, #tpu.memory_space<vmem>> -> memref<1x32xf32, #tpu.memory_space<vmem>>
    %375 = tpu.memref_slice %arg6[%c1_i32_335, %c6_i32_336] : memref<2x8x!tpu.dma_semaphore, #tpu.memory_space<semaphore_mem>> -> memref<1x1x!tpu.dma_semaphore, #tpu.memory_space<semaphore_mem>>
    %376 = tpu.memref_squeeze %375 : memref<1x1x!tpu.dma_semaphore, #tpu.memory_space<semaphore_mem>> -> memref<!tpu.dma_semaphore, #tpu.memory_space<semaphore_mem>>
    tpu.wait_dma2 semaphore(%376 : memref<!tpu.dma_semaphore, #tpu.memory_space<semaphore_mem>>) src(%373 : memref<1x32xf32, #tpu.memory_space<any>>) dst(%374 : memref<1x32xf32, #tpu.memory_space<vmem>>)
    %c0_i32_341 = arith.constant 0 : i32
    %c7_i32_342 = arith.constant 7 : i32
    %c0_i32_343 = arith.constant 0 : i32
    %c0_i32_344 = arith.constant 0 : i32
    %377 = tpu.memref_slice %arg2[%c0_i32_343, %c0_i32_344] : memref<64x32xf32, #tpu.memory_space<any>> -> memref<1x32xf32, #tpu.memory_space<any>>
    %c0_i32_345 = arith.constant 0 : i32
    %c0_i32_346 = arith.constant 0 : i32
    %378 = tpu.memref_slice %arg4[%c0_i32_345, %c0_i32_346] : memref<16x32xf32, #tpu.memory_space<vmem>> -> memref<1x32xf32, #tpu.memory_space<vmem>>
    %379 = tpu.memref_slice %arg6[%c0_i32_341, %c7_i32_342] : memref<2x8x!tpu.dma_semaphore, #tpu.memory_space<semaphore_mem>> -> memref<1x1x!tpu.dma_semaphore, #tpu.memory_space<semaphore_mem>>
    %380 = tpu.memref_squeeze %379 : memref<1x1x!tpu.dma_semaphore, #tpu.memory_space<semaphore_mem>> -> memref<!tpu.dma_semaphore, #tpu.memory_space<semaphore_mem>>
    tpu.wait_dma2 semaphore(%380 : memref<!tpu.dma_semaphore, #tpu.memory_space<semaphore_mem>>) src(%377 : memref<1x32xf32, #tpu.memory_space<any>>) dst(%378 : memref<1x32xf32, #tpu.memory_space<vmem>>)
    %c1_i32_347 = arith.constant 1 : i32
    %c7_i32_348 = arith.constant 7 : i32
    %c0_i32_349 = arith.constant 0 : i32
    %c0_i32_350 = arith.constant 0 : i32
    %381 = tpu.memref_slice %arg3[%c0_i32_349, %c0_i32_350] : memref<64x32xf32, #tpu.memory_space<any>> -> memref<1x32xf32, #tpu.memory_space<any>>
    %c0_i32_351 = arith.constant 0 : i32
    %c0_i32_352 = arith.constant 0 : i32
    %382 = tpu.memref_slice %arg5[%c0_i32_351, %c0_i32_352] : memref<16x32xf32, #tpu.memory_space<vmem>> -> memref<1x32xf32, #tpu.memory_space<vmem>>
    %383 = tpu.memref_slice %arg6[%c1_i32_347, %c7_i32_348] : memref<2x8x!tpu.dma_semaphore, #tpu.memory_space<semaphore_mem>> -> memref<1x1x!tpu.dma_semaphore, #tpu.memory_space<semaphore_mem>>
    %384 = tpu.memref_squeeze %383 : memref<1x1x!tpu.dma_semaphore, #tpu.memory_space<semaphore_mem>> -> memref<!tpu.dma_semaphore, #tpu.memory_space<semaphore_mem>>
    tpu.wait_dma2 semaphore(%384 : memref<!tpu.dma_semaphore, #tpu.memory_space<semaphore_mem>>) src(%381 : memref<1x32xf32, #tpu.memory_space<any>>) dst(%382 : memref<1x32xf32, #tpu.memory_space<vmem>>)
    return
  }
  func.func @transform_2(%arg0: i32, %arg1: memref<16xi32, #tpu.memory_space<smem>>) -> (i32, i32) {
    %c0_i32 = arith.constant 0 : i32
    %c0_i32_0 = arith.constant 0 : i32
    return %arg0, %c0_i32 : i32, i32
  }
  func.func @transform_3(%arg0: i32, %arg1: memref<16xi32, #tpu.memory_space<smem>>) -> (i32, i32) {
    %c0_i32 = arith.constant 0 : i32
    %c0_i32_0 = arith.constant 0 : i32
    return %arg0, %c0_i32 : i32, i32
  }
}

</mosaic_0001>

<bundles_post_ra>
// kernel: tpu_custom_call.1
= control target key start
LH: loop header
LB: loop body
LE: loop exit
PB: predicated region body
PF: predicated region fallthrough
CT: control target
= control target key end

     0   :  { %s2440_s0 = inlined_call_operand.vmem [shape: s32[16], index: 0, kind: input, shape index: {}]   ;;  %s2441_s1 = inlined_call_operand.vmem [shape: f32[64,32], index: 1, kind: input, shape index: {}]   ;;  %s2442_s2 = inlined_call_operand.vmem [shape: f32[64,32], index: 2, kind: input, shape index: {}]   ;;  %s2443_s3 = inlined_call_operand.hbm [shape: f32[16,32], index: 3, kind: output, shape index: {0}]   ;;  %s2444_s4 = inlined_call_operand.hbm [shape: f32[16,32], index: 4, kind: output, shape index: {1}]  }
   0x1   :  { %s10_s17 = sshll.u32 %s2440_s0, 4  ;;  %s11_s17 = int_to_ptr.vmem [resolvable:$true] %s10_s17 }
   0x2   :  { %s2161_s18 = scalar_lea.vmem %s11_s17, 16  ;;  %p2166_p1 = scmp.lt.s32.totalorder %s11_s17, %s11_s17 }
   0x3   :  { %p2162_p0 = scmp.ne.s32.totalorder %s11_s17, %s2161_s18  ;;  %p2167_p2 = scmp.lt.s32.totalorder %s2161_s18, %s2161_s18 }
   0x5   :  { %p2168_p3 = por %p2167_p2, %p2166_p1 }
   0x7   :  { %p2169_p4 = pnand %p2168_p3, %p2162_p0 }
   0x9   :  { %2172 = shalt.err (!%p2169_p4)  }
   0xa   :  { %s2287_s19 = smov [#allocation4]  }
   0xb   :  { %13 = dma.vmem_to_smem %s11_s17, 16, %s2287_s19, [#allocation3] }
   0xc   :  { %2217 = dma.done.wait [#allocation3], 16 }
   0xd   :  { %2218 = vsyncadd [#allocation3], 4294967280 }
   0xe   :  { %15 = sfence }
   0xf   :  { %16 = vsyncpa [#allocation6], 0 }
  0x10   :  { %17 = vsyncpa [#allocation8], 0  ;;  %s19_s20 = sld [smem:[#allocation4]] }
  0x16   :  { %s20_s0 = scalar_lea.vmem %s2441_s1, %s19_s20 }
  0x17   :  { %v38_v0 = vld [vmem:[%s20_s0] sm:$0x1] }
  0x18   :  { %39 = vst [vmem:[#allocation5] sm:$0x1] %v38_v0 }
  0x19   :  { %64 = vsyncadd [#allocation2], 16  ;;  %s65_s25 = scalar_lea.vmem %s2442_s2, %s19_s20 }
  0x1a   :  { %v84_v1 = vld [vmem:[%s65_s25] sm:$0x1] }
  0x1b   :  { %85 = vst [vmem:[#allocation7] sm:$0x1] %v84_v1 }
  0x1c   :  { %110 = vsyncadd [#allocation2 + $0x8], 16  ;;  %s2125_s26 = sld [smem:[#allocation4 + $0x1]] }
  0x22   :  { %s113_s29 = scalar_lea.vmem %s2441_s1, %s2125_s26 }
  0x23   :  { %v133_v2 = vld [vmem:[%s113_s29] sm:$0x1] }
  0x24   :  { %134 = vst [vmem:[#allocation5 + $0x1] sm:$0x1] %v133_v2 }
  0x25   :  { %159 = vsyncadd [#allocation2 + $0x1], 16  ;;  %s160_s6 = scalar_lea.vmem %s2442_s2, %s2125_s26 }
  0x26   :  { %v180_v3 = vld [vmem:[%s160_s6] sm:$0x1] }
  0x27   :  { %181 = vst [vmem:[#allocation7 + $0x1] sm:$0x1] %v180_v3 }
  0x28   :  { %206 = vsyncadd [#allocation2 + $0x9], 16  ;;  %s2126_s7 = sld [smem:[#allocation4 + $0x2]] }
  0x2e   :  { %s209_s10 = scalar_lea.vmem %s2441_s1, %s2126_s7 }
  0x2f   :  { %v229_v4 = vld [vmem:[%s209_s10] sm:$0x1] }
  0x30   :  { %230 = vst [vmem:[#allocation5 + $0x2] sm:$0x1] %v229_v4 }
  0x31   :  { %255 = vsyncadd [#allocation2 + $0x2], 16  ;;  %s256_s13 = scalar_lea.vmem %s2442_s2, %s2126_s7 }
  0x32   :  { %v276_v5 = vld [vmem:[%s256_s13] sm:$0x1] }
  0x33   :  { %277 = vst [vmem:[#allocation7 + $0x2] sm:$0x1] %v276_v5 }
  0x34   :  { %302 = vsyncadd [#allocation2 + $0xa], 16  ;;  %s2127_s14 = sld [smem:[#allocation4 + $0x3]] }
  0x3a   :  { %s305_s17 = scalar_lea.vmem %s2441_s1, %s2127_s14 }
  0x3b   :  { %v325_v6 = vld [vmem:[%s305_s17] sm:$0x1] }
  0x3c   :  { %326 = vst [vmem:[#allocation5 + $0x3] sm:$0x1] %v325_v6 }
  0x3d   :  { %351 = vsyncadd [#allocation2 + $0x3], 16  ;;  %s352_s20 = scalar_lea.vmem %s2442_s2, %s2127_s14 }
  0x3e   :  { %v372_v7 = vld [vmem:[%s352_s20] sm:$0x1] }
  0x3f   :  { %373 = vst [vmem:[#allocation7 + $0x3] sm:$0x1] %v372_v7 }
  0x40   :  { %398 = vsyncadd [#allocation2 + $0xb], 16  ;;  %s2128_s21 = sld [smem:[#allocation4 + $0x4]] }
  0x46   :  { %s401_s23 = scalar_lea.vmem %s2441_s1, %s2128_s21 }
  0x47   :  { %v421_v8 = vld [vmem:[%s401_s23] sm:$0x1] }
  0x48   :  { %422 = vst [vmem:[#allocation5 + $0x4] sm:$0x1] %v421_v8 }
  0x49   :  { %447 = vsyncadd [#allocation2 + $0x4], 16  ;;  %s448_s26 = scalar_lea.vmem %s2442_s2, %s2128_s21 }
  0x4a   :  { %v468_v9 = vld [vmem:[%s448_s26] sm:$0x1] }
  0x4b   :  { %469 = vst [vmem:[#allocation7 + $0x4] sm:$0x1] %v468_v9 }
  0x4c   :  { %494 = vsyncadd [#allocation2 + $0xc], 16  ;;  %s2129_s27 = sld [smem:[#allocation4 + $0x5]] }
  0x52   :  { %s497_s30 = scalar_lea.vmem %s2441_s1, %s2129_s27 }
  0x53   :  { %v517_v10 = vld [vmem:[%s497_s30] sm:$0x1] }
  0x54   :  { %518 = vst [vmem:[#allocation5 + $0x5] sm:$0x1] %v517_v10 }
  0x55   :  { %543 = vsyncadd [#allocation2 + $0x5], 16  ;;  %s544_s7 = scalar_lea.vmem %s2442_s2, %s2129_s27 }
  0x56   :  { %v564_v11 = vld [vmem:[%s544_s7] sm:$0x1] }
  0x57   :  { %565 = vst [vmem:[#allocation7 + $0x5] sm:$0x1] %v564_v11 }
  0x58   :  { %590 = vsyncadd [#allocation2 + $0xd], 16  ;;  %s2130_s8 = sld [smem:[#allocation4 + $0x6]] }
  0x5e   :  { %s593_s11 = scalar_lea.vmem %s2441_s1, %s2130_s8 }
  0x5f   :  { %v613_v12 = vld [vmem:[%s593_s11] sm:$0x1] }
  0x60   :  { %614 = vst [vmem:[#allocation5 + $0x6] sm:$0x1] %v613_v12 }
  0x61   :  { %639 = vsyncadd [#allocation2 + $0x6], 16  ;;  %s640_s14 = scalar_lea.vmem %s2442_s2, %s2130_s8 }
  0x62   :  { %v660_v13 = vld [vmem:[%s640_s14] sm:$0x1] }
  0x63   :  { %661 = vst [vmem:[#allocation7 + $0x6] sm:$0x1] %v660_v13 }
  0x64   :  { %686 = vsyncadd [#allocation2 + $0xe], 16  ;;  %s2131_s15 = sld [smem:[#allocation4 + $0x7]] }
  0x6a   :  { %s689_s18 = scalar_lea.vmem %s2441_s1, %s2131_s15 }
  0x6b   :  { %v709_v14 = vld [vmem:[%s689_s18] sm:$0x1] }
  0x6c   :  { %710 = vst [vmem:[#allocation5 + $0x7] sm:$0x1] %v709_v14 }
  0x6d   :  { %735 = vsyncadd [#allocation2 + $0x7], 16  ;;  %s736_s21 = scalar_lea.vmem %s2442_s2, %s2131_s15 }
  0x6e   :  { %v756_v15 = vld [vmem:[%s736_s21] sm:$0x1] }
  0x6f   :  { %757 = vst [vmem:[#allocation7 + $0x7] sm:$0x1] %v756_v15 }
  0x70   :  { %782 = vsyncadd [#allocation2 + $0xf], 16 }
  0x71   :  { %2219 = dma.done.wait [#allocation2], 16 }
  0x72   :  { %2220 = vsyncadd [#allocation2], 4294967280 }
  0x73   :  { %2221 = dma.done.wait [#allocation2 + $0x8], 16 }
  0x74   :  { %2222 = vsyncadd [#allocation2 + $0x8], 4294967280  ;;  %s2132_s22 = sld [smem:[#allocation4 + $0x8]] }
  0x7a   :  { %s790_s24 = scalar_lea.vmem %s2441_s1, %s2132_s22 }
  0x7b   :  { %v809_v16 = vld [vmem:[%s790_s24] sm:$0x1] }
  0x7c   :  { %810 = vst [vmem:[#allocation5 + $0x8] sm:$0x1] %v809_v16 }
  0x7d   :  { %835 = vsyncadd [#allocation2], 16  ;;  %s836_s27 = scalar_lea.vmem %s2442_s2, %s2132_s22 }
  0x7e   :  { %v855_v17 = vld [vmem:[%s836_s27] sm:$0x1] }
  0x7f   :  { %856 = vst [vmem:[#allocation7 + $0x8] sm:$0x1] %v855_v17 }
  0x80   :  { %881 = vsyncadd [#allocation2 + $0x8], 16 }
  0x81   :  { %2223 = dma.done.wait [#allocation2 + $0x1], 16 }
  0x82   :  { %2224 = vsyncadd [#allocation2 + $0x1], 4294967280 }
  0x83   :  { %2225 = dma.done.wait [#allocation2 + $0x9], 16 }
  0x84   :  { %2226 = vsyncadd [#allocation2 + $0x9], 4294967280  ;;  %s2133_s28 = sld [smem:[#allocation4 + $0x9]] }
  0x8a   :  { %s888_s5 = scalar_lea.vmem %s2441_s1, %s2133_s28 }
  0x8b   :  { %v907_v18 = vld [vmem:[%s888_s5] sm:$0x1] }
  0x8c   :  { %908 = vst [vmem:[#allocation5 + $0x9] sm:$0x1] %v907_v18 }
  0x8d   :  { %933 = vsyncadd [#allocation2 + $0x1], 16  ;;  %s934_s8 = scalar_lea.vmem %s2442_s2, %s2133_s28 }
  0x8e   :  { %v953_v19 = vld [vmem:[%s934_s8] sm:$0x1] }
  0x8f   :  { %954 = vst [vmem:[#allocation7 + $0x9] sm:$0x1] %v953_v19 }
  0x90   :  { %979 = vsyncadd [#allocation2 + $0x9], 16 }
  0x91   :  { %2227 = dma.done.wait [#allocation2 + $0x2], 16 }
  0x92   :  { %2228 = vsyncadd [#allocation2 + $0x2], 4294967280 }
  0x93   :  { %2229 = dma.done.wait [#allocation2 + $0xa], 16 }
  0x94   :  { %2230 = vsyncadd [#allocation2 + $0xa], 4294967280  ;;  %s2134_s9 = sld [smem:[#allocation4 + $0xa]] }
  0x9a   :  { %s986_s12 = scalar_lea.vmem %s2441_s1, %s2134_s9 }
  0x9b   :  { %v1005_v20 = vld [vmem:[%s986_s12] sm:$0x1] }
  0x9c   :  { %1006 = vst [vmem:[#allocation5 + $0xa] sm:$0x1] %v1005_v20 }
  0x9d   :  { %1031 = vsyncadd [#allocation2 + $0x2], 16  ;;  %s1032_s15 = scalar_lea.vmem %s2442_s2, %s2134_s9 }
  0x9e   :  { %v1051_v21 = vld [vmem:[%s1032_s15] sm:$0x1] }
  0x9f   :  { %1052 = vst [vmem:[#allocation7 + $0xa] sm:$0x1] %v1051_v21 }
  0xa0   :  { %1077 = vsyncadd [#allocation2 + $0xa], 16 }
  0xa1   :  { %2231 = dma.done.wait [#allocation2 + $0x3], 16 }
  0xa2   :  { %2232 = vsyncadd [#allocation2 + $0x3], 4294967280 }
  0xa3   :  { %2233 = dma.done.wait [#allocation2 + $0xb], 16 }
  0xa4   :  { %2234 = vsyncadd [#allocation2 + $0xb], 4294967280  ;;  %s2135_s16 = sld [smem:[#allocation4 + $0xb]] }
  0xaa   :  { %s1084_s19 = scalar_lea.vmem %s2441_s1, %s2135_s16 }
  0xab   :  { %v1103_v22 = vld [vmem:[%s1084_s19] sm:$0x1] }
  0xac   :  { %1104 = vst [vmem:[#allocation5 + $0xb] sm:$0x1] %v1103_v22 }
  0xad   :  { %1129 = vsyncadd [#allocation2 + $0x3], 16  ;;  %s1130_s22 = scalar_lea.vmem %s2442_s2, %s2135_s16 }
  0xae   :  { %v1149_v23 = vld [vmem:[%s1130_s22] sm:$0x1] }
  0xaf   :  { %1150 = vst [vmem:[#allocation7 + $0xb] sm:$0x1] %v1149_v23 }
  0xb0   :  { %1175 = vsyncadd [#allocation2 + $0xb], 16 }
  0xb1   :  { %2235 = dma.done.wait [#allocation2 + $0x4], 16 }
  0xb2   :  { %2236 = vsyncadd [#allocation2 + $0x4], 4294967280 }
  0xb3   :  { %2237 = dma.done.wait [#allocation2 + $0xc], 16 }
  0xb4   :  { %2238 = vsyncadd [#allocation2 + $0xc], 4294967280  ;;  %s2136_s0 = sld [smem:[#allocation4 + $0xc]] }
  0xba   :  { %s1182_s25 = scalar_lea.vmem %s2441_s1, %s2136_s0 }
  0xbb   :  { %v1201_v24 = vld [vmem:[%s1182_s25] sm:$0x1] }
  0xbc   :  { %1202 = vst [vmem:[#allocation5 + $0xc] sm:$0x1] %v1201_v24 }
  0xbd   :  { %1227 = vsyncadd [#allocation2 + $0x4], 16  ;;  %s1228_s28 = scalar_lea.vmem %s2442_s2, %s2136_s0 }
  0xbe   :  { %v1247_v25 = vld [vmem:[%s1228_s28] sm:$0x1] }
  0xbf   :  { %1248 = vst [vmem:[#allocation7 + $0xc] sm:$0x1] %v1247_v25 }
  0xc0   :  { %1273 = vsyncadd [#allocation2 + $0xc], 16 }
  0xc1   :  { %2239 = dma.done.wait [#allocation2 + $0x5], 16 }
  0xc2   :  { %2240 = vsyncadd [#allocation2 + $0x5], 4294967280 }
  0xc3   :  { %2241 = dma.done.wait [#allocation2 + $0xd], 16 }
  0xc4   :  { %2242 = vsyncadd [#allocation2 + $0xd], 4294967280  ;;  %s2137_s29 = sld [smem:[#allocation4 + $0xd]] }
  0xca   :  { %s1280_s6 = scalar_lea.vmem %s2441_s1, %s2137_s29 }
  0xcb   :  { %v1299_v26 = vld [vmem:[%s1280_s6] sm:$0x1] }
  0xcc   :  { %1300 = vst [vmem:[#allocation5 + $0xd] sm:$0x1] %v1299_v26 }
  0xcd   :  { %1325 = vsyncadd [#allocation2 + $0x5], 16  ;;  %s1326_s9 = scalar_lea.vmem %s2442_s2, %s2137_s29 }
  0xce   :  { %v1345_v27 = vld [vmem:[%s1326_s9] sm:$0x1] }
  0xcf   :  { %1346 = vst [vmem:[#allocation7 + $0xd] sm:$0x1] %v1345_v27 }
  0xd0   :  { %1371 = vsyncadd [#allocation2 + $0xd], 16 }
  0xd1   :  { %2243 = dma.done.wait [#allocation2 + $0x6], 16 }
  0xd2   :  { %2244 = vsyncadd [#allocation2 + $0x6], 4294967280 }
  0xd3   :  { %2245 = dma.done.wait [#allocation2 + $0xe], 16 }
  0xd4   :  { %2246 = vsyncadd [#allocation2 + $0xe], 4294967280  ;;  %s2138_s10 = sld [smem:[#allocation4 + $0xe]] }
  0xda   :  { %s1378_s13 = scalar_lea.vmem %s2441_s1, %s2138_s10 }
  0xdb   :  { %v1397_v28 = vld [vmem:[%s1378_s13] sm:$0x1] }
  0xdc   :  { %1398 = vst [vmem:[#allocation5 + $0xe] sm:$0x1] %v1397_v28 }
  0xdd   :  { %1423 = vsyncadd [#allocation2 + $0x6], 16  ;;  %s1424_s16 = scalar_lea.vmem %s2442_s2, %s2138_s10 }
  0xde   :  { %v1443_v29 = vld [vmem:[%s1424_s16] sm:$0x1] }
  0xdf   :  { %1444 = vst [vmem:[#allocation7 + $0xe] sm:$0x1] %v1443_v29 }
  0xe0   :  { %1469 = vsyncadd [#allocation2 + $0xe], 16 }
  0xe1   :  { %2247 = dma.done.wait [#allocation2 + $0x7], 16 }
  0xe2   :  { %2248 = vsyncadd [#allocation2 + $0x7], 4294967280 }
  0xe3   :  { %2249 = dma.done.wait [#allocation2 + $0xf], 16 }
  0xe4   :  { %2250 = vsyncadd [#allocation2 + $0xf], 4294967280  ;;  %s2139_s17 = sld [smem:[#allocation4 + $0xf]] }
  0xea   :  { %s1476_s20 = scalar_lea.vmem %s2441_s1, %s2139_s17 }
  0xeb   :  { %v1495_v30 = vld [vmem:[%s1476_s20] sm:$0x1] }
  0xec   :  { %1496 = vst [vmem:[#allocation5 + $0xf] sm:$0x1] %v1495_v30 }
  0xed   :  { %1521 = vsyncadd [#allocation2 + $0x7], 16  ;;  %s1522_s0 = scalar_lea.vmem %s2442_s2, %s2139_s17 }
  0xee   :  { %v1541_v31 = vld [vmem:[%s1522_s0] sm:$0x1] }
  0xef   :  { %1542 = vst [vmem:[#allocation7 + $0xf] sm:$0x1] %v1541_v31 }
  0xf0   :  { %1567 = vsyncadd [#allocation2 + $0xf], 16 }
  0xf1   :  { %2251 = dma.done.wait [#allocation2], 16 }
  0xf2   :  { %2252 = vsyncadd [#allocation2], 4294967280 }
  0xf3   :  { %2253 = dma.done.wait [#allocation2 + $0x8], 16 }
  0xf4   :  { %2254 = vsyncadd [#allocation2 + $0x8], 4294967280 }
  0xf5   :  { %2255 = dma.done.wait [#allocation2 + $0x1], 16 }
  0xf6   :  { %2256 = vsyncadd [#allocation2 + $0x1], 4294967280 }
  0xf7   :  { %2257 = dma.done.wait [#allocation2 + $0x9], 16 }
  0xf8   :  { %2258 = vsyncadd [#allocation2 + $0x9], 4294967280 }
  0xf9   :  { %2259 = dma.done.wait [#allocation2 + $0x2], 16 }
  0xfa   :  { %2260 = vsyncadd [#allocation2 + $0x2], 4294967280 }
  0xfb   :  { %2261 = dma.done.wait [#allocation2 + $0xa], 16 }
  0xfc   :  { %2262 = vsyncadd [#allocation2 + $0xa], 4294967280 }
  0xfd   :  { %2263 = dma.done.wait [#allocation2 + $0x3], 16 }
  0xfe   :  { %2264 = vsyncadd [#allocation2 + $0x3], 4294967280 }
  0xff   :  { %2265 = dma.done.wait [#allocation2 + $0xb], 16 }
 0x100   :  { %2266 = vsyncadd [#allocation2 + $0xb], 4294967280 }
 0x101   :  { %2267 = dma.done.wait [#allocation2 + $0x4], 16 }
 0x102   :  { %2268 = vsyncadd [#allocation2 + $0x4], 4294967280 }
 0x103   :  { %2269 = dma.done.wait [#allocation2 + $0xc], 16 }
 0x104   :  { %2270 = vsyncadd [#allocation2 + $0xc], 4294967280 }
 0x105   :  { %2271 = dma.done.wait [#allocation2 + $0x5], 16 }
 0x106   :  { %2272 = vsyncadd [#allocation2 + $0x5], 4294967280 }
 0x107   :  { %2273 = dma.done.wait [#allocation2 + $0xd], 16 }
 0x108   :  { %2274 = vsyncadd [#allocation2 + $0xd], 4294967280 }
 0x109   :  { %2275 = dma.done.wait [#allocation2 + $0x6], 16 }
 0x10a   :  { %2276 = vsyncadd [#allocation2 + $0x6], 4294967280 }
 0x10b   :  { %2277 = dma.done.wait [#allocation2 + $0xe], 16 }
 0x10c   :  { %2278 = vsyncadd [#allocation2 + $0xe], 4294967280 }
 0x10d   :  { %2279 = dma.done.wait [#allocation2 + $0x7], 16 }
 0x10e   :  { %2280 = vsyncadd [#allocation2 + $0x7], 4294967280 }
 0x10f   :  { %2281 = dma.done.wait [#allocation2 + $0xf], 16 }
 0x110   :  { %2282 = vsyncadd [#allocation2 + $0xf], 4294967280  ;;  %s2288_s1 = smov [#allocation5]  }
 0x111   :  { %s1605_s2 = sshll.u32 %s2288_s1, 4  ;;  %s1606_s2 = int_to_ptr.vmem [resolvable:$true] %s1605_s2 }
 0x112   :  { %s2173_s23 = scalar_lea.vmem %s1606_s2, 256  ;;  %p2178_p6 = scmp.lt.s32.totalorder %s1606_s2, %s1606_s2 }
 0x113   :  { %p2174_p5 = scmp.ne.s32.totalorder %s1606_s2, %s2173_s23  ;;  %p2179_p7 = scmp.lt.s32.totalorder %s2173_s23, %s2173_s23 }
 0x115   :  { %p2180_p8 = por %p2179_p7, %p2178_p6 }
 0x117   :  { %p2181_p9 = pnand %p2180_p8, %p2174_p5 }
 0x119   :  { %2184 = shalt.err (!%p2181_p9)
}
 0x11a   :  { %s2185_s26 = scalar_lea.hbm %s2443_s3, 256 }
 0x11b   :  { %p2186_p10 = scmp.ne.s32.totalorder %s2443_s3, %s2185_s26  ;;  %p2189_p11 = scmp.lt.u32.totalorder %s2185_s26, %s2443_s3 }
 0x11d   :  { %p2191_p12 = pnand %p2189_p11, %p2186_p10 }
 0x11f   :  { %2194 = shalt.err (!%p2191_p12)
}
 0x120   :  { %s2289_s5 = smov 128   ;;  %s2290_s6 = smov 8  }
 0x121   :  { %1611 = dma.vmem_to_hbm [thread:$0]  %s1606_s2, 256, %s2443_s3, [#allocation6], %s2289_s5, %s2289_s5, %s2290_s6  }
 0x122   :  { %s2291_s9 = smov [#allocation7]  }
 0x123   :  { %s1617_s10 = sshll.u32 %s2291_s9, 4  ;;  %s1618_s10 = int_to_ptr.vmem [resolvable:$true] %s1617_s10 }
 0x124   :  { %s2195_s11 = scalar_lea.vmem %s1618_s10, 256  ;;  %p2200_p0 = scmp.lt.s32.totalorder %s1618_s10, %s1618_s10 }
 0x125   :  { %p2196_p13 = scmp.ne.s32.totalorder %s1618_s10, %s2195_s11  ;;  %p2201_p1 = scmp.lt.s32.totalorder %s2195_s11, %s2195_s11 }
 0x127   :  { %p2202_p2 = por %p2201_p1, %p2200_p0 }
 0x129   :  { %p2203_p3 = pnand %p2202_p2, %p2196_p13 }
 0x12b   :  { %2206 = shalt.err (!%p2203_p3)
}
 0x12c   :  { %s2207_s14 = scalar_lea.hbm %s2444_s4, 256 }
 0x12d   :  { %p2208_p4 = scmp.ne.s32.totalorder %s2444_s4, %s2207_s14  ;;  %p2211_p5 = scmp.lt.u32.totalorder %s2207_s14, %s2444_s4 }
 0x12f   :  { %p2213_p6 = pnand %p2211_p5, %p2208_p4 }
 0x131   :  { %2216 = shalt.err (!%p2213_p6)
}
 0x132   :  { %1623 = dma.vmem_to_hbm [thread:$0]  %s1618_s10, 256, %s2444_s4, [#allocation8], %s2289_s5, %s2289_s5, %s2290_s6  }
 0x133   :  { %2283 = dma.done.wait [#allocation6], 256  }
 0x134   :  { %2284 = vsyncadd [#allocation6], 4294967040 }
 0x135   :  { %2285 = dma.done.wait [#allocation8], 256  }
 0x136   :  { %2286 = vsyncadd [#allocation8], 4294967040 }
 0x137   :  { %1630 = vsyncpa [#allocation6], 1 }
 0x138   :  { %1631 = vsyncpa [#allocation8], 1 }
 0x139   :  { %1632 = vsyncmov [#allocation2] }
 0x13c   :  { %s1633_s20 = vpop.sfrf %1632 }
 0x13d   :  { %p2140_p7 = scmp.ne.s32.totalorder %s1633_s20, 0 }
 0x13f   :  { %1637 = shalt.err (%p2140_p7)  }
 0x140   :  { %1639 = vsyncmov [#allocation2 + $0x1] }
 0x143   :  { %s1640_s21 = vpop.sfrf %1639 }
 0x144   :  { %p2141_p8 = scmp.ne.s32.totalorder %s1640_s21, 0 }
 0x146   :  { %1644 = shalt.err (%p2141_p8)  }
 0x147   :  { %1646 = vsyncmov [#allocation2 + $0x2] }
 0x14a   :  { %s1647_s22 = vpop.sfrf %1646 }
 0x14b   :  { %p2142_p9 = scmp.ne.s32.totalorder %s1647_s22, 0 }
 0x14d   :  { %1651 = shalt.err (%p2142_p9)  }
 0x14e   :  { %1653 = vsyncmov [#allocation2 + $0x3] }
 0x151   :  { %s1654_s4 = vpop.sfrf %1653 }
 0x152   :  { %p2143_p10 = scmp.ne.s32.totalorder %s1654_s4, 0 }
 0x154   :  { %1658 = shalt.err (%p2143_p10)  }
 0x155   :  { %1660 = vsyncmov [#allocation2 + $0x4] }
 0x158   :  { %s1661_s0 = vpop.sfrf %1660 }
 0x159   :  { %p2144_p11 = scmp.ne.s32.totalorder %s1661_s0, 0 }
 0x15b   :  { %1665 = shalt.err (%p2144_p11)  }
 0x15c   :  { %1667 = vsyncmov [#allocation2 + $0x5] }
 0x15f   :  { %s1668_s1 = vpop.sfrf %1667 }
 0x160   :  { %p2145_p12 = scmp.ne.s32.totalorder %s1668_s1, 0 }
 0x162   :  { %1672 = shalt.err (%p2145_p12)  }
 0x163   :  { %1674 = vsyncmov [#allocation2 + $0x6] }
 0x166   :  { %s1675_s2 = vpop.sfrf %1674 }
 0x167   :  { %p2146_p13 = scmp.ne.s32.totalorder %s1675_s2, 0 }
 0x169   :  { %1679 = shalt.err (%p2146_p13)  }
 0x16a   :  { %1681 = vsyncmov [#allocation2 + $0x7] }
 0x16d   :  { %s1682_s23 = vpop.sfrf %1681 }
 0x16e   :  { %p2147_p0 = scmp.ne.s32.totalorder %s1682_s23, 0 }
 0x170   :  { %1686 = shalt.err (%p2147_p0)  }
 0x171   :  { %1688 = vsyncmov [#allocation2 + $0x8] }
 0x174   :  { %s1689_s24 = vpop.sfrf %1688 }
 0x175   :  { %p2148_p1 = scmp.ne.s32.totalorder %s1689_s24, 0 }
 0x177   :  { %1693 = shalt.err (%p2148_p1)  }
 0x178   :  { %1695 = vsyncmov [#allocation2 + $0x9] }
 0x17b   :  { %s1696_s25 = vpop.sfrf %1695 }
 0x17c   :  { %p2149_p2 = scmp.ne.s32.totalorder %s1696_s25, 0 }
 0x17e   :  { %1700 = shalt.err (%p2149_p2)  }
 0x17f   :  { %1702 = vsyncmov [#allocation2 + $0xa] }
 0x182   :  { %s1703_s26 = vpop.sfrf %1702 }
 0x183   :  { %p2150_p3 = scmp.ne.s32.totalorder %s1703_s26, 0 }
 0x185   :  { %1707 = shalt.err (%p2150_p3)  }
 0x186   :  { %1709 = vsyncmov [#allocation2 + $0xb] }
 0x189   :  { %s1710_s27 = vpop.sfrf %1709 }
 0x18a   :  { %p2151_p4 = scmp.ne.s32.totalorder %s1710_s27, 0 }
 0x18c   :  { %1714 = shalt.err (%p2151_p4)  }
 0x18d   :  { %1716 = vsyncmov [#allocation2 + $0xc] }
 0x190   :  { %s1717_s28 = vpop.sfrf %1716 }
 0x191   :  { %p2152_p5 = scmp.ne.s32.totalorder %s1717_s28, 0 }
 0x193   :  { %1721 = shalt.err (%p2152_p5)  }
 0x194   :  { %1723 = vsyncmov [#allocation2 + $0xd] }
 0x197   :  { %s1724_s29 = vpop.sfrf %1723 }
 0x198   :  { %p2153_p6 = scmp.ne.s32.totalorder %s1724_s29, 0 }
 0x19a   :  { %1728 = shalt.err (%p2153_p6)  }
 0x19b   :  { %1730 = vsyncmov [#allocation2 + $0xe] }
 0x19e   :  { %s1731_s30 = vpop.sfrf %1730 }
 0x19f   :  { %p2154_p7 = scmp.ne.s32.totalorder %s1731_s30, 0 }
 0x1a1   :  { %1735 = shalt.err (%p2154_p7)  }
 0x1a2   :  { %1737 = vsyncmov [#allocation2 + $0xf] }
 0x1a5   :  { %s1738_s5 = vpop.sfrf %1737 }
 0x1a6   :  { %p2155_p8 = scmp.ne.s32.totalorder %s1738_s5, 0 }
 0x1a8   :  { %1742 = shalt.err (%p2155_p8)  }

</bundles_post_ra>
